<compile_context>
chip_gen: v7x
topology: tpu7x:2x2x1
jax: 0.10.0
libtpu: 0.0.40
codegen_flags: <defaults>
</compile_context>

<pallas_src>
import functools

import jax
import jax.numpy as jnp
from jax.experimental import pallas as pl
from jax.experimental.pallas import tpu as pltpu

# ---- model hyper-parameters (small, consistent with the module) -------------
WORD_EMBED_SIZE = 32          # E : output word embedding size
CHAR_EMBED_SIZE = 50          # C : char embedding size (fixed to 50 in module)
KERNEL_SIZE = 5               # K : CNN kernel size (standard a5 value)
MAX_WORD_LEN = 16             # L : max word length (chars per word)
CHAR_VOCAB = 96               # V : |char vocab|
VPAD = 128                    # V padded to one lane tile for aligned matmuls
PAD_IDX = 0                   # padding char index (embedding row zeroed)

SENT_LEN = 8
BATCH = 2

MAX_TN = 256                  # max words per grid step (sublane-aligned)


def _round_up(n, m):
    return ((n + m - 1) // m) * m


def _char_cnn_highway_kernel(ids_ref, wm_ref, bc_ref, whw_ref, bhw_ref, o_ref,
                             *, L, K, E, Vp):
    """Per block of TN words.

    ids_ref : (TN, L)      int32 char ids
    wm_ref  : (K*Vp, E)    folded  emb @ conv_w  (one 128-row slab per tap k)
    bc_ref  : (1, E)       conv bias
    whw_ref : (E, 2E)      [proj_w | gate_w]
    bhw_ref : (1, 2E)      [proj_b | gate_b]
    o_ref   : (TN, E)
    """
    tn = ids_ref.shape[0]
    T = L - K + 1
    ids = ids_ref[...]                                            # (TN, L) int32
    viota = jax.lax.broadcasted_iota(jnp.int32, (tn, Vp), 1)
    # One-hot code per char position; each is exactly one lane tile wide.
    oh = [(ids[:, l:l + 1] == viota).astype(jnp.float32) for l in range(L)]
    wm = wm_ref[...]                                              # (K*Vp, E)

    conv_max = None
    for t in range(T):
        # Lane-aligned window of K one-hot tiles -> (TN, K*Vp)
        window = jnp.concatenate([oh[t + k] for k in range(K)], axis=1)
        raw = jnp.dot(window, wm, preferred_element_type=jnp.float32)   # (TN, E)
        conv_max = raw if conv_max is None else jnp.maximum(conv_max, raw)

    # Hoisted bias + ReLU:  max_t relu(x_t + b) == relu(max_t x_t + b)
    x_conv_out = jnp.maximum(conv_max + bc_ref[...], 0.0)         # (TN, E)

    # Highway: single fused matmul, then split proj / gate columns.
    hw = (jnp.dot(x_conv_out, whw_ref[...], preferred_element_type=jnp.float32)
          + bhw_ref[...])                                         # (TN, 2E)
    x_proj = jnp.maximum(hw[:, :E], 0.0)
    x_gate = pl.reciprocal(1.0 + jnp.exp(-hw[:, E:]), approx=True)  # sigmoid (EUP)
    x_highway = x_gate * x_proj + (1.0 - x_gate) * x_conv_out

    # TODO(synk): nn.Dropout(0.3) is identity at inference; training-mode dropout
    # (pltpu.prng_*) is not implemented here.
    o_ref[...] = x_highway.astype(o_ref.dtype)


def char_cnn_embed(char_ids_2d, wm, bc, whw, bhw, *, L, K, E, Vp):
    """char_ids_2d: (N, L) int32 -> (N, E) float32 via the Pallas kernel."""
    N = char_ids_2d.shape[0]
    assert L >= K
    TN = min(MAX_TN, _round_up(N, 8))
    n_pad = _round_up(N, TN)
    if n_pad != N:
        char_ids_2d = jnp.pad(char_ids_2d, ((0, n_pad - N), (0, 0)),
                              constant_values=PAD_IDX)

    kernel = functools.partial(_char_cnn_highway_kernel, L=L, K=K, E=E, Vp=Vp)
    out = pl.pallas_call(
        kernel,
        out_shape=jax.ShapeDtypeStruct((n_pad, E), jnp.float32),
        grid_spec=pltpu.PrefetchScalarGridSpec(
            num_scalar_prefetch=0,
            grid=(n_pad // TN,),
            in_specs=[
                pl.BlockSpec((TN, L), lambda i: (i, 0)),        # char ids
                pl.BlockSpec((K * Vp, E), lambda i: (0, 0)),    # folded conv weight
                pl.BlockSpec((1, E), lambda i: (0, 0)),         # conv bias
                pl.BlockSpec((E, 2 * E), lambda i: (0, 0)),     # highway weight
                pl.BlockSpec((1, 2 * E), lambda i: (0, 0)),     # highway bias
            ],
            out_specs=pl.BlockSpec((TN, E), lambda i: (i, 0)),
        ),
        compiler_params=pltpu.CompilerParams(
            dimension_semantics=("parallel",),
            vmem_limit_bytes=32 * 1024 * 1024),
    )(char_ids_2d, wm, bc, whw, bhw)
    return out[:N]


def init_params(key):
    """Deterministic parameter init (shapes from ModelEmbeddings.__init__)."""
    ks = jax.random.split(key, 6)
    char_emb = jax.random.normal(ks[0], (CHAR_VOCAB, CHAR_EMBED_SIZE),
                                 jnp.float32) * 0.1
    char_emb = char_emb.at[PAD_IDX].set(0.0)            # padding_idx row = 0
    # Conv1d weight in PyTorch layout (E, C, K)
    conv_w = jax.random.normal(ks[1], (WORD_EMBED_SIZE, CHAR_EMBED_SIZE,
                                       KERNEL_SIZE), jnp.float32) * 0.05
    conv_b = jax.random.normal(ks[2], (1, WORD_EMBED_SIZE), jnp.float32) * 0.05
    proj_w = jax.random.normal(ks[3], (WORD_EMBED_SIZE, WORD_EMBED_SIZE),
                               jnp.float32) * 0.1
    proj_b = jnp.zeros((1, WORD_EMBED_SIZE), jnp.float32)
    gate_w = jax.random.normal(ks[4], (WORD_EMBED_SIZE, WORD_EMBED_SIZE),
                               jnp.float32) * 0.1
    gate_b = jnp.full((1, WORD_EMBED_SIZE), -1.0, jnp.float32)
    return dict(char_emb=char_emb, conv_w=conv_w, conv_b=conv_b,
                proj_w=proj_w, proj_b=proj_b, gate_w=gate_w, gate_b=gate_b)


def fold_kernel_params(params):
    """Fold emb table into conv weights, fuse highway proj/gate weights."""
    w_kce = jnp.transpose(params["conv_w"], (2, 1, 0))              # (K, C, E)
    m = jnp.einsum("vc,kce->kve", params["char_emb"], w_kce)        # (K, V, E)
    m = jnp.pad(m, ((0, 0), (0, VPAD - CHAR_VOCAB), (0, 0)))        # (K, Vp, E)
    wm = m.reshape(KERNEL_SIZE * VPAD, WORD_EMBED_SIZE)             # (K*Vp, E)
    whw = jnp.concatenate([params["proj_w"], params["gate_w"]], axis=1)  # (E, 2E)
    bhw = jnp.concatenate([params["proj_b"], params["gate_b"]], axis=1)  # (1, 2E)
    return wm, params["conv_b"], whw, bhw


def model_embeddings_forward(char_ids, params):
    """char_ids: (sent_len, batch, max_word_len) int32
       returns : (sent_len, batch, word_embed_size) float32"""
    S, B, L = char_ids.shape
    wm, bc, whw, bhw = fold_kernel_params(params)
    out = char_cnn_embed(char_ids.reshape(S * B, L), wm, bc, whw, bhw,
                         L=L, K=KERNEL_SIZE, E=WORD_EMBED_SIZE, Vp=VPAD)
    return out.reshape(S, B, WORD_EMBED_SIZE)


def _reference_forward(char_ids, params):
    """Pure-JAX reference (gather -> conv -> relu -> maxpool -> highway)."""
    S, B, L = char_ids.shape
    N = S * B
    x = params["char_emb"][char_ids.reshape(N, L)]                 # (N, L, C)
    outs = []
    for t in range(L - KERNEL_SIZE + 1):
        win = x[:, t:t + KERNEL_SIZE, :]                           # (N, K, C)
        outs.append(jnp.einsum("nkc,eck->ne", win, params["conv_w"])
                    + params["conv_b"])
    conv = jnp.stack(outs, axis=1)                                 # (N, T, E)
    conv_out = jnp.max(jax.nn.relu(conv), axis=1)                  # (N, E)
    proj = jax.nn.relu(conv_out @ params["proj_w"] + params["proj_b"])
    gate = jax.nn.sigmoid(conv_out @ params["gate_w"] + params["gate_b"])
    hw = gate * proj + (1.0 - gate) * conv_out
    return hw.reshape(S, B, WORD_EMBED_SIZE)


if __name__ == "__main__":
    key = jax.random.PRNGKey(0)
    pkey, dkey, dkey2 = jax.random.split(key, 3)
    params = init_params(pkey)

    # Small shape consistent with the module.
    char_ids = jax.random.randint(dkey, (SENT_LEN, BATCH, MAX_WORD_LEN),
                                  0, CHAR_VOCAB, dtype=jnp.int32)
    out = jax.block_until_ready(model_embeddings_forward(char_ids, params))
    assert out.shape == (SENT_LEN, BATCH, WORD_EMBED_SIZE)
    ref = jax.block_until_ready(_reference_forward(char_ids, params))
    assert jnp.allclose(out, ref, atol=2e-3, rtol=2e-3), "mismatch vs reference"

    # Larger shape: exercises TN=256 tiling, N-padding and a multi-step grid.
    char_ids_l = jax.random.randint(dkey2, (32, 16, MAX_WORD_LEN),
                                    0, CHAR_VOCAB, dtype=jnp.int32)
    out_l = jax.block_until_ready(model_embeddings_forward(char_ids_l, params))
    ref_l = jax.block_until_ready(_reference_forward(char_ids_l, params))
    assert out_l.shape == (32, 16, WORD_EMBED_SIZE)
    assert jnp.allclose(out_l, ref_l, atol=2e-3, rtol=2e-3), "mismatch (large)"

    print("KERNEL_OK")
</pallas_src>

<mosaic_0001>
module attributes {stable_mosaic.version = 11 : i64} {
  func.func @_char_cnn_highway_kernel(%arg0: i32, %arg1: memref<16x16xi32, #tpu.memory_space<vmem>>, %arg2: memref<640x32xf32, #tpu.memory_space<vmem>>, %arg3: memref<1x32xf32, #tpu.memory_space<vmem>>, %arg4: memref<32x64xf32, #tpu.memory_space<vmem>>, %arg5: memref<1x64xf32, #tpu.memory_space<vmem>>, %arg6: memref<16x32xf32, #tpu.memory_space<vmem>>) attributes {dimension_semantics = [#tpu.dimension_semantics<parallel>], iteration_bounds = array<i64: 1>, scalar_prefetch = 0 : i64, scratch_operands = 0 : i64, tpu.core_type = #tpu.core_type<tc>, window_params = [{transform_indices = @transform_0, window_bounds = array<i64: 16, 16>}, {pipeline_mode = #tpu.pipeline_mode<synchronous>, transform_indices = @transform_1, window_bounds = array<i64: 640, 32>}, {pipeline_mode = #tpu.pipeline_mode<synchronous>, transform_indices = @transform_2, window_bounds = array<i64: 1, 32>}, {pipeline_mode = #tpu.pipeline_mode<synchronous>, transform_indices = @transform_3, window_bounds = array<i64: 32, 64>}, {pipeline_mode = #tpu.pipeline_mode<synchronous>, transform_indices = @transform_4, window_bounds = array<i64: 1, 64>}, {transform_indices = @transform_5, window_bounds = array<i64: 16, 32>}]} {
    %c0 = arith.constant 0 : index
    %c0_0 = arith.constant 0 : index
    %0 = vector.load %arg1[%c0, %c0_0] : memref<16x16xi32, #tpu.memory_space<vmem>>, vector<16x16xi32>
    %1 = tpu.iota {dimensions = array<i32: 1>} : vector<16x128xi32>
    %2 = vector.extract_strided_slice %0 {offsets = [0, 0], sizes = [16, 1], strides = [1, 1]} : vector<16x16xi32> to vector<16x1xi32>
    %3 = vector.broadcast %2 : vector<16x1xi32> to vector<16x128xi32>
    %4 = arith.cmpi eq, %3, %1 : vector<16x128xi32>
    %5 = arith.extui %4 : vector<16x128xi1> to vector<16x128xi32>
    %6 = arith.sitofp %5 : vector<16x128xi32> to vector<16x128xf32>
    %7 = vector.extract_strided_slice %0 {offsets = [0, 1], sizes = [16, 1], strides = [1, 1]} : vector<16x16xi32> to vector<16x1xi32>
    %8 = vector.broadcast %7 : vector<16x1xi32> to vector<16x128xi32>
    %9 = arith.cmpi eq, %8, %1 : vector<16x128xi32>
    %10 = arith.extui %9 : vector<16x128xi1> to vector<16x128xi32>
    %11 = arith.sitofp %10 : vector<16x128xi32> to vector<16x128xf32>
    %12 = vector.extract_strided_slice %0 {offsets = [0, 2], sizes = [16, 1], strides = [1, 1]} : vector<16x16xi32> to vector<16x1xi32>
    %13 = vector.broadcast %12 : vector<16x1xi32> to vector<16x128xi32>
    %14 = arith.cmpi eq, %13, %1 : vector<16x128xi32>
    %15 = arith.extui %14 : vector<16x128xi1> to vector<16x128xi32>
    %16 = arith.sitofp %15 : vector<16x128xi32> to vector<16x128xf32>
    %17 = vector.extract_strided_slice %0 {offsets = [0, 3], sizes = [16, 1], strides = [1, 1]} : vector<16x16xi32> to vector<16x1xi32>
    %18 = vector.broadcast %17 : vector<16x1xi32> to vector<16x128xi32>
    %19 = arith.cmpi eq, %18, %1 : vector<16x128xi32>
    %20 = arith.extui %19 : vector<16x128xi1> to vector<16x128xi32>
    %21 = arith.sitofp %20 : vector<16x128xi32> to vector<16x128xf32>
    %22 = vector.extract_strided_slice %0 {offsets = [0, 4], sizes = [16, 1], strides = [1, 1]} : vector<16x16xi32> to vector<16x1xi32>
    %23 = vector.broadcast %22 : vector<16x1xi32> to vector<16x128xi32>
    %24 = arith.cmpi eq, %23, %1 : vector<16x128xi32>
    %25 = arith.extui %24 : vector<16x128xi1> to vector<16x128xi32>
    %26 = arith.sitofp %25 : vector<16x128xi32> to vector<16x128xf32>
    %27 = vector.extract_strided_slice %0 {offsets = [0, 5], sizes = [16, 1], strides = [1, 1]} : vector<16x16xi32> to vector<16x1xi32>
    %28 = vector.broadcast %27 : vector<16x1xi32> to vector<16x128xi32>
    %29 = arith.cmpi eq, %28, %1 : vector<16x128xi32>
    %30 = arith.extui %29 : vector<16x128xi1> to vector<16x128xi32>
    %31 = arith.sitofp %30 : vector<16x128xi32> to vector<16x128xf32>
    %32 = vector.extract_strided_slice %0 {offsets = [0, 6], sizes = [16, 1], strides = [1, 1]} : vector<16x16xi32> to vector<16x1xi32>
    %33 = vector.broadcast %32 : vector<16x1xi32> to vector<16x128xi32>
    %34 = arith.cmpi eq, %33, %1 : vector<16x128xi32>
    %35 = arith.extui %34 : vector<16x128xi1> to vector<16x128xi32>
    %36 = arith.sitofp %35 : vector<16x128xi32> to vector<16x128xf32>
    %37 = vector.extract_strided_slice %0 {offsets = [0, 7], sizes = [16, 1], strides = [1, 1]} : vector<16x16xi32> to vector<16x1xi32>
    %38 = vector.broadcast %37 : vector<16x1xi32> to vector<16x128xi32>
    %39 = arith.cmpi eq, %38, %1 : vector<16x128xi32>
    %40 = arith.extui %39 : vector<16x128xi1> to vector<16x128xi32>
    %41 = arith.sitofp %40 : vector<16x128xi32> to vector<16x128xf32>
    %42 = vector.extract_strided_slice %0 {offsets = [0, 8], sizes = [16, 1], strides = [1, 1]} : vector<16x16xi32> to vector<16x1xi32>
    %43 = vector.broadcast %42 : vector<16x1xi32> to vector<16x128xi32>
    %44 = arith.cmpi eq, %43, %1 : vector<16x128xi32>
    %45 = arith.extui %44 : vector<16x128xi1> to vector<16x128xi32>
    %46 = arith.sitofp %45 : vector<16x128xi32> to vector<16x128xf32>
    %47 = vector.extract_strided_slice %0 {offsets = [0, 9], sizes = [16, 1], strides = [1, 1]} : vector<16x16xi32> to vector<16x1xi32>
    %48 = vector.broadcast %47 : vector<16x1xi32> to vector<16x128xi32>
    %49 = arith.cmpi eq, %48, %1 : vector<16x128xi32>
    %50 = arith.extui %49 : vector<16x128xi1> to vector<16x128xi32>
    %51 = arith.sitofp %50 : vector<16x128xi32> to vector<16x128xf32>
    %52 = vector.extract_strided_slice %0 {offsets = [0, 10], sizes = [16, 1], strides = [1, 1]} : vector<16x16xi32> to vector<16x1xi32>
    %53 = vector.broadcast %52 : vector<16x1xi32> to vector<16x128xi32>
    %54 = arith.cmpi eq, %53, %1 : vector<16x128xi32>
    %55 = arith.extui %54 : vector<16x128xi1> to vector<16x128xi32>
    %56 = arith.sitofp %55 : vector<16x128xi32> to vector<16x128xf32>
    %57 = vector.extract_strided_slice %0 {offsets = [0, 11], sizes = [16, 1], strides = [1, 1]} : vector<16x16xi32> to vector<16x1xi32>
    %58 = vector.broadcast %57 : vector<16x1xi32> to vector<16x128xi32>
    %59 = arith.cmpi eq, %58, %1 : vector<16x128xi32>
    %60 = arith.extui %59 : vector<16x128xi1> to vector<16x128xi32>
    %61 = arith.sitofp %60 : vector<16x128xi32> to vector<16x128xf32>
    %62 = vector.extract_strided_slice %0 {offsets = [0, 12], sizes = [16, 1], strides = [1, 1]} : vector<16x16xi32> to vector<16x1xi32>
    %63 = vector.broadcast %62 : vector<16x1xi32> to vector<16x128xi32>
    %64 = arith.cmpi eq, %63, %1 : vector<16x128xi32>
    %65 = arith.extui %64 : vector<16x128xi1> to vector<16x128xi32>
    %66 = arith.sitofp %65 : vector<16x128xi32> to vector<16x128xf32>
    %67 = vector.extract_strided_slice %0 {offsets = [0, 13], sizes = [16, 1], strides = [1, 1]} : vector<16x16xi32> to vector<16x1xi32>
    %68 = vector.broadcast %67 : vector<16x1xi32> to vector<16x128xi32>
    %69 = arith.cmpi eq, %68, %1 : vector<16x128xi32>
    %70 = arith.extui %69 : vector<16x128xi1> to vector<16x128xi32>
    %71 = arith.sitofp %70 : vector<16x128xi32> to vector<16x128xf32>
    %72 = vector.extract_strided_slice %0 {offsets = [0, 14], sizes = [16, 1], strides = [1, 1]} : vector<16x16xi32> to vector<16x1xi32>
    %73 = vector.broadcast %72 : vector<16x1xi32> to vector<16x128xi32>
    %74 = arith.cmpi eq, %73, %1 : vector<16x128xi32>
    %75 = arith.extui %74 : vector<16x128xi1> to vector<16x128xi32>
    %76 = arith.sitofp %75 : vector<16x128xi32> to vector<16x128xf32>
    %77 = vector.extract_strided_slice %0 {offsets = [0, 15], sizes = [16, 1], strides = [1, 1]} : vector<16x16xi32> to vector<16x1xi32>
    %78 = vector.broadcast %77 : vector<16x1xi32> to vector<16x128xi32>
    %79 = arith.cmpi eq, %78, %1 : vector<16x128xi32>
    %80 = arith.extui %79 : vector<16x128xi1> to vector<16x128xi32>
    %81 = arith.sitofp %80 : vector<16x128xi32> to vector<16x128xf32>
    %c0_1 = arith.constant 0 : index
    %c0_2 = arith.constant 0 : index
    %82 = vector.load %arg2[%c0_1, %c0_2] : memref<640x32xf32, #tpu.memory_space<vmem>>, vector<640x32xf32>
    %83 = tpu.concatenate %6, %11, %16, %21, %26 in 1 : vector<16x128xf32>, vector<16x128xf32>, vector<16x128xf32>, vector<16x128xf32>, vector<16x128xf32> -> vector<16x640xf32>
    %cst = arith.constant dense<0.000000e+00> : vector<16x32xf32>
    %84 = tpu.matmul %83, %82, %cst {dimension_numbers = #tpu.dot_dimension_numbers<[1], [0], [0], [1], [0, 0, 1, 1], [], []>} : vector<16x640xf32>, vector<640x32xf32>, vector<16x32xf32> -> vector<16x32xf32>
    %85 = tpu.concatenate %11, %16, %21, %26, %31 in 1 : vector<16x128xf32>, vector<16x128xf32>, vector<16x128xf32>, vector<16x128xf32>, vector<16x128xf32> -> vector<16x640xf32>
    %cst_3 = arith.constant dense<0.000000e+00> : vector<16x32xf32>
    %86 = tpu.matmul %85, %82, %cst_3 {dimension_numbers = #tpu.dot_dimension_numbers<[1], [0], [0], [1], [0, 0, 1, 1], [], []>} : vector<16x640xf32>, vector<640x32xf32>, vector<16x32xf32> -> vector<16x32xf32>
    %87 = arith.maximumf %84, %86 : vector<16x32xf32>
    %88 = tpu.concatenate %16, %21, %26, %31, %36 in 1 : vector<16x128xf32>, vector<16x128xf32>, vector<16x128xf32>, vector<16x128xf32>, vector<16x128xf32> -> vector<16x640xf32>
    %cst_4 = arith.constant dense<0.000000e+00> : vector<16x32xf32>
    %89 = tpu.matmul %88, %82, %cst_4 {dimension_numbers = #tpu.dot_dimension_numbers<[1], [0], [0], [1], [0, 0, 1, 1], [], []>} : vector<16x640xf32>, vector<640x32xf32>, vector<16x32xf32> -> vector<16x32xf32>
    %90 = arith.maximumf %87, %89 : vector<16x32xf32>
    %91 = tpu.concatenate %21, %26, %31, %36, %41 in 1 : vector<16x128xf32>, vector<16x128xf32>, vector<16x128xf32>, vector<16x128xf32>, vector<16x128xf32> -> vector<16x640xf32>
    %cst_5 = arith.constant dense<0.000000e+00> : vector<16x32xf32>
    %92 = tpu.matmul %91, %82, %cst_5 {dimension_numbers = #tpu.dot_dimension_numbers<[1], [0], [0], [1], [0, 0, 1, 1], [], []>} : vector<16x640xf32>, vector<640x32xf32>, vector<16x32xf32> -> vector<16x32xf32>
    %93 = arith.maximumf %90, %92 : vector<16x32xf32>
    %94 = tpu.concatenate %26, %31, %36, %41, %46 in 1 : vector<16x128xf32>, vector<16x128xf32>, vector<16x128xf32>, vector<16x128xf32>, vector<16x128xf32> -> vector<16x640xf32>
    %cst_6 = arith.constant dense<0.000000e+00> : vector<16x32xf32>
    %95 = tpu.matmul %94, %82, %cst_6 {dimension_numbers = #tpu.dot_dimension_numbers<[1], [0], [0], [1], [0, 0, 1, 1], [], []>} : vector<16x640xf32>, vector<640x32xf32>, vector<16x32xf32> -> vector<16x32xf32>
    %96 = arith.maximumf %93, %95 : vector<16x32xf32>
    %97 = tpu.concatenate %31, %36, %41, %46, %51 in 1 : vector<16x128xf32>, vector<16x128xf32>, vector<16x128xf32>, vector<16x128xf32>, vector<16x128xf32> -> vector<16x640xf32>
    %cst_7 = arith.constant dense<0.000000e+00> : vector<16x32xf32>
    %98 = tpu.matmul %97, %82, %cst_7 {dimension_numbers = #tpu.dot_dimension_numbers<[1], [0], [0], [1], [0, 0, 1, 1], [], []>} : vector<16x640xf32>, vector<640x32xf32>, vector<16x32xf32> -> vector<16x32xf32>
    %99 = arith.maximumf %96, %98 : vector<16x32xf32>
    %100 = tpu.concatenate %36, %41, %46, %51, %56 in 1 : vector<16x128xf32>, vector<16x128xf32>, vector<16x128xf32>, vector<16x128xf32>, vector<16x128xf32> -> vector<16x640xf32>
    %cst_8 = arith.constant dense<0.000000e+00> : vector<16x32xf32>
    %101 = tpu.matmul %100, %82, %cst_8 {dimension_numbers = #tpu.dot_dimension_numbers<[1], [0], [0], [1], [0, 0, 1, 1], [], []>} : vector<16x640xf32>, vector<640x32xf32>, vector<16x32xf32> -> vector<16x32xf32>
    %102 = arith.maximumf %99, %101 : vector<16x32xf32>
    %103 = tpu.concatenate %41, %46, %51, %56, %61 in 1 : vector<16x128xf32>, vector<16x128xf32>, vector<16x128xf32>, vector<16x128xf32>, vector<16x128xf32> -> vector<16x640xf32>
    %cst_9 = arith.constant dense<0.000000e+00> : vector<16x32xf32>
    %104 = tpu.matmul %103, %82, %cst_9 {dimension_numbers = #tpu.dot_dimension_numbers<[1], [0], [0], [1], [0, 0, 1, 1], [], []>} : vector<16x640xf32>, vector<640x32xf32>, vector<16x32xf32> -> vector<16x32xf32>
    %105 = arith.maximumf %102, %104 : vector<16x32xf32>
    %106 = tpu.concatenate %46, %51, %56, %61, %66 in 1 : vector<16x128xf32>, vector<16x128xf32>, vector<16x128xf32>, vector<16x128xf32>, vector<16x128xf32> -> vector<16x640xf32>
    %cst_10 = arith.constant dense<0.000000e+00> : vector<16x32xf32>
    %107 = tpu.matmul %106, %82, %cst_10 {dimension_numbers = #tpu.dot_dimension_numbers<[1], [0], [0], [1], [0, 0, 1, 1], [], []>} : vector<16x640xf32>, vector<640x32xf32>, vector<16x32xf32> -> vector<16x32xf32>
    %108 = arith.maximumf %105, %107 : vector<16x32xf32>
    %109 = tpu.concatenate %51, %56, %61, %66, %71 in 1 : vector<16x128xf32>, vector<16x128xf32>, vector<16x128xf32>, vector<16x128xf32>, vector<16x128xf32> -> vector<16x640xf32>
    %cst_11 = arith.constant dense<0.000000e+00> : vector<16x32xf32>
    %110 = tpu.matmul %109, %82, %cst_11 {dimension_numbers = #tpu.dot_dimension_numbers<[1], [0], [0], [1], [0, 0, 1, 1], [], []>} : vector<16x640xf32>, vector<640x32xf32>, vector<16x32xf32> -> vector<16x32xf32>
    %111 = arith.maximumf %108, %110 : vector<16x32xf32>
    %112 = tpu.concatenate %56, %61, %66, %71, %76 in 1 : vector<16x128xf32>, vector<16x128xf32>, vector<16x128xf32>, vector<16x128xf32>, vector<16x128xf32> -> vector<16x640xf32>
    %cst_12 = arith.constant dense<0.000000e+00> : vector<16x32xf32>
    %113 = tpu.matmul %112, %82, %cst_12 {dimension_numbers = #tpu.dot_dimension_numbers<[1], [0], [0], [1], [0, 0, 1, 1], [], []>} : vector<16x640xf32>, vector<640x32xf32>, vector<16x32xf32> -> vector<16x32xf32>
    %114 = arith.maximumf %111, %113 : vector<16x32xf32>
    %115 = tpu.concatenate %61, %66, %71, %76, %81 in 1 : vector<16x128xf32>, vector<16x128xf32>, vector<16x128xf32>, vector<16x128xf32>, vector<16x128xf32> -> vector<16x640xf32>
    %cst_13 = arith.constant dense<0.000000e+00> : vector<16x32xf32>
    %116 = tpu.matmul %115, %82, %cst_13 {dimension_numbers = #tpu.dot_dimension_numbers<[1], [0], [0], [1], [0, 0, 1, 1], [], []>} : vector<16x640xf32>, vector<640x32xf32>, vector<16x32xf32> -> vector<16x32xf32>
    %117 = arith.maximumf %114, %116 : vector<16x32xf32>
    %c0_14 = arith.constant 0 : index
    %c0_15 = arith.constant 0 : index
    %118 = vector.load %arg3[%c0_14, %c0_15] : memref<1x32xf32, #tpu.memory_space<vmem>>, vector<1x32xf32>
    %119 = vector.broadcast %118 : vector<1x32xf32> to vector<16x32xf32>
    %120 = arith.addf %117, %119 : vector<16x32xf32>
    %cst_16 = arith.constant 0.000000e+00 : f32
    %121 = vector.broadcast %cst_16 : f32 to vector<16x32xf32>
    %122 = arith.maximumf %120, %121 : vector<16x32xf32>
    %c0_17 = arith.constant 0 : index
    %c0_18 = arith.constant 0 : index
    %123 = vector.load %arg4[%c0_17, %c0_18] : memref<32x64xf32, #tpu.memory_space<vmem>>, vector<32x64xf32>
    %cst_19 = arith.constant dense<0.000000e+00> : vector<16x64xf32>
    %124 = tpu.matmul %122, %123, %cst_19 {dimension_numbers = #tpu.dot_dimension_numbers<[1], [0], [0], [1], [0, 0, 1, 1], [], []>} : vector<16x32xf32>, vector<32x64xf32>, vector<16x64xf32> -> vector<16x64xf32>
    %c0_20 = arith.constant 0 : index
    %c0_21 = arith.constant 0 : index
    %125 = vector.load %arg5[%c0_20, %c0_21] : memref<1x64xf32, #tpu.memory_space<vmem>>, vector<1x64xf32>
    %126 = vector.broadcast %125 : vector<1x64xf32> to vector<16x64xf32>
    %127 = arith.addf %124, %126 : vector<16x64xf32>
    %128 = vector.extract_strided_slice %127 {offsets = [0, 0], sizes = [16, 32], strides = [1, 1]} : vector<16x64xf32> to vector<16x32xf32>
    %cst_22 = arith.constant 0.000000e+00 : f32
    %129 = vector.broadcast %cst_22 : f32 to vector<16x32xf32>
    %130 = arith.maximumf %128, %129 : vector<16x32xf32>
    %131 = vector.extract_strided_slice %127 {offsets = [0, 32], sizes = [16, 32], strides = [1, 1]} : vector<16x64xf32> to vector<16x32xf32>
    %cst_23 = arith.constant 0.000000e+00 : f32
    %132 = vector.broadcast %cst_23 : f32 to vector<16x32xf32>
    %133 = arith.subf %132, %131 : vector<16x32xf32>
    %134 = math.exp %133 : vector<16x32xf32>
    %cst_24 = arith.constant 1.000000e+00 : f32
    %135 = vector.broadcast %cst_24 : f32 to vector<16x32xf32>
    %136 = arith.addf %135, %134 : vector<16x32xf32>
    %137 = tpu.reciprocal %136 {approx = true} : vector<16x32xf32> -> vector<16x32xf32>
    %138 = arith.mulf %137, %130 : vector<16x32xf32>
    %cst_25 = arith.constant 1.000000e+00 : f32
    %139 = vector.broadcast %cst_25 : f32 to vector<16x32xf32>
    %140 = arith.subf %139, %137 : vector<16x32xf32>
    %141 = arith.mulf %140, %122 : vector<16x32xf32>
    %142 = arith.addf %138, %141 : vector<16x32xf32>
    %c0_26 = arith.constant 0 : index
    %c0_27 = arith.constant 0 : index
    %143 = vector.load %arg6[%c0_26, %c0_27] : memref<16x32xf32, #tpu.memory_space<vmem>>, vector<16x32xf32>
    tpu.vector_store %arg6[%c0_26, %c0_27], %142 {strides = array<i32>} : memref<16x32xf32, #tpu.memory_space<vmem>>, vector<16x32xf32>,
    return
  }
  func.func @transform_0(%arg0: i32) -> (i32, i32) {
    %c0_i32 = arith.constant 0 : i32
    %c0_i32_0 = arith.constant 0 : i32
    return %arg0, %c0_i32 : i32, i32
  }
  func.func @transform_1(%arg0: i32) -> (i32, i32) {
    %c0_i32 = arith.constant 0 : i32
    %c0_i32_0 = arith.constant 0 : i32
    %c0_i32_1 = arith.constant 0 : i32
    return %c0_i32, %c0_i32_0 : i32, i32
  }
  func.func @transform_2(%arg0: i32) -> (i32, i32) {
    %c0_i32 = arith.constant 0 : i32
    %c0_i32_0 = arith.constant 0 : i32
    %c0_i32_1 = arith.constant 0 : i32
    return %c0_i32, %c0_i32_0 : i32, i32
  }
  func.func @transform_3(%arg0: i32) -> (i32, i32) {
    %c0_i32 = arith.constant 0 : i32
    %c0_i32_0 = arith.constant 0 : i32
    %c0_i32_1 = arith.constant 0 : i32
    return %c0_i32, %c0_i32_0 : i32, i32
  }
  func.func @transform_4(%arg0: i32) -> (i32, i32) {
    %c0_i32 = arith.constant 0 : i32
    %c0_i32_0 = arith.constant 0 : i32
    %c0_i32_1 = arith.constant 0 : i32
    return %c0_i32, %c0_i32_0 : i32, i32
  }
  func.func @transform_5(%arg0: i32) -> (i32, i32) {
    %c0_i32 = arith.constant 0 : i32
    %c0_i32_0 = arith.constant 0 : i32
    return %arg0, %c0_i32 : i32, i32
  }
}

</mosaic_0001>

<bundles_post_ra>
// kernel: tpu_custom_call.1
= control target key start
LH: loop header
LB: loop body
LE: loop exit
PB: predicated region body
PF: predicated region fallthrough
CT: control target
= control target key end

     0   :  { %v6148_v1 = vmov 3   ;;  %v6149_v2 = vmov 1   ;;  %v6150_v24 = vmov 2   ;;  %v6151_v25 = vmov 0   ;;  %s7753_s0 = inlined_call_operand.vmem [shape: s32[16,16], index: 0, kind: input, shape index: {}]   ;;  %s7754_s1 = inlined_call_operand.vmem [shape: f32[640,32], index: 1, kind: input, shape index: {}]   ;;  %s7755_s2 = inlined_call_operand.vmem [shape: f32[1,32], index: 2, kind: input, shape index: {}]   ;;  %s7756_s3 = inlined_call_operand.vmem [shape: f32[32,64], index: 3, kind: input, shape index: {}]   ;;  %s7757_s4 = inlined_call_operand.vmem [shape: f32[1,64], index: 4, kind: input, shape index: {}]   ;;  %s7758_s5 = inlined_call_operand.hbm [shape: f32[16,32], index: 5, kind: output, shape index: {}]  }
   0x1   :  { %v6203_v0 = vld [vmem:[%s7753_s0] sm:$0xff]  ;;  %6088 = vset.pattern.permute.xlu1 %v6148_v1  ;;  %6086 = vset.pattern.permute.xlu0 %v6149_v2  ;;  %v234_v4 = vld [vmem:[%s7754_s1 + $0x88] sm:$0xff]  ;;  %v235_v14 = vld [vmem:[%s7754_s1 + $0x90] sm:$0xff]  ;;  %v6152_v53 = vmov 4  }
   0x2   :  { %v233_v3 = vld [vmem:[%s7754_s1 + $0x80] sm:$0xff]  ;;  %62 = vperm.xlu1 %6088, %v6203_v0   ;;  %38 = vperm.xlu0 %6086, %v6203_v0   ;;  %v266_v7 = vld [vmem:[%s7754_s1 + $0x188] sm:$0xff]  ;;  %v236_v16 = vld [vmem:[%s7754_s1 + $0x98] sm:$0xff] }
   0x3   :  { %v265_v5 = vld [vmem:[%s7754_s1 + $0x180] sm:$0xff]  ;;  %v6217_v6 = vpack.c.bf16 %v234_v4, %v233_v3  ;;  %v218_v9 = vld [vmem:[%s7754_s1 + $0x8] sm:$0xff]  ;;  %v267_v17 = vld [vmem:[%s7754_s1 + $0x190] sm:$0xff]  ;;  %v6255_v19 = vpack.c.bf16 %v236_v16, %v235_v14 }
   0x4   :  { %v217_v8 = vld [vmem:[%s7754_s1] sm:$0xff]  ;;  %v6228_v10 = vpack.c.bf16 %v266_v7, %v265_v5  ;;  %v250_v13 = vld [vmem:[%s7754_s1 + $0x108] sm:$0xff]  ;;  %v268_v18 = vld [vmem:[%s7754_s1 + $0x198] sm:$0xff]  ;;  %v6153_v7 = vmov 5  }
   0x5   :  { %v6230_v11 = vpack.c.bf16 %v218_v9, %v217_v8  ;;  %v249_v12 = vld [vmem:[%s7754_s1 + $0x100] sm:$0xff]  ;;  %4905 = vmatprep.subr.bf16.mxu0 %v6217_v6  ;;  %v6257_v20 = vpack.c.bf16 %v268_v18, %v267_v17  ;;  %v219_v21 = vld [vmem:[%s7754_s1 + $0x10] sm:$0xff]  ;;  %v220_v22 = vld [vmem:[%s7754_s1 + $0x18] sm:$0xff] }
   0x6   :  { %v6242_v15 = vpack.c.bf16 %v250_v13, %v249_v12  ;;  %4937 = vmatprep.subr.bf16.mxu1 %v6228_v10  ;;  %v251_v23 = vld [vmem:[%s7754_s1 + $0x110] sm:$0xff]  ;;  %6089 = vset.pattern.permute.xlu1 %v6150_v24  ;;  %v6269_v26 = vpack.c.bf16 %v220_v22, %v219_v21  ;;  %v252_v27 = vld [vmem:[%s7754_s1 + $0x118] sm:$0xff]  ;;  %v237_v28 = vld [vmem:[%s7754_s1 + $0xa0] sm:$0xff] }
   0x7   :  { %4907 = vmatpush3.bf16.msra.mxu0 %v6230_v11  ;;  %6087 = vset.pattern.permute.xlu0 %v6151_v25  ;;  %v238_v29 = vld [vmem:[%s7754_s1 + $0xa8] sm:$0xff]  ;;  %v269_v31 = vld [vmem:[%s7754_s1 + $0x1a0] sm:$0xff]  ;;  %v6300_v35 = vpack.c.bf16 %v252_v27, %v251_v23  ;;  %v239_v39 = vld [vmem:[%s7754_s1 + $0xb0] sm:$0xff] }
   0x8   :  { %50 = vperm.xlu1 %6089, %v6203_v0   ;;  %26 = vperm.xlu0 %6087, %v6203_v0   ;;  %v6282_v30 = vpack.c.bf16 %v238_v29, %v237_v28  ;;  %v270_v32 = vld [vmem:[%s7754_s1 + $0x1a8] sm:$0xff]  ;;  %v221_v33 = vld [vmem:[%s7754_s1 + $0x20] sm:$0xff]  ;;  %v240_v40 = vld [vmem:[%s7754_s1 + $0xb8] sm:$0xff] }
   0x9   :  { %v6296_v34 = vld [vmem:[%s7753_s0 + $0x8] sm:$0xff]  ;;  %4939 = vmatpush3.bf16.msra.mxu1 %v6242_v15  ;;  %4909 = vmatprep.subr.bf16.mxu0 %v6255_v19  ;;  %v6307_v37 = vpack.c.bf16 %v270_v32, %v269_v31  ;;  %v253_v41 = vld [vmem:[%s7754_s1 + $0x120] sm:$0xff]  ;;  %v6324_v43 = vpack.c.bf16 %v240_v40, %v239_v39  ;;  %v271_v44 = vld [vmem:[%s7754_s1 + $0x1b0] sm:$0xff]  ;;  %v6154_v32 = vmov 6  }
   0xa   :  { %v222_v36 = vld [vmem:[%s7754_s1 + $0x28] sm:$0xff]  ;;  %4941 = vmatprep.subr.bf16.mxu1 %v6257_v20  ;;  %v272_v45 = vld [vmem:[%s7754_s1 + $0x1b8] sm:$0xff]  ;;  %v223_v46 = vld [vmem:[%s7754_s1 + $0x30] sm:$0xff] }
   0xb   :  { %4911 = vmatpush3.bf16.msra.mxu0 %v6269_v26  ;;  %v6309_v38 = vpack.c.bf16 %v222_v36, %v221_v33  ;;  %v254_v42 = vld [vmem:[%s7754_s1 + $0x128] sm:$0xff]  ;;  %v224_v47 = vld [vmem:[%s7754_s1 + $0x38] sm:$0xff]  ;;  %v241_v48 = vld [vmem:[%s7754_s1 + $0xc0] sm:$0xff]  ;;  %v6352_v51 = vpack.c.bf16 %v272_v45, %v271_v44 }
   0xc   :  { %4913 = vmatprep.subr.bf16.mxu0 %v6282_v30  ;;  %6090 = vset.pattern.permute.xlu1 %v6149_v2  ;;  %v242_v49 = vld [vmem:[%s7754_s1 + $0xc8] sm:$0xff]  ;;  %v6349_v50 = vpack.c.bf16 %v254_v42, %v253_v41  ;;  %v6354_v52 = vpack.c.bf16 %v224_v47, %v223_v46  ;;  %v255_v54 = vld [vmem:[%s7754_s1 + $0x130] sm:$0xff]  ;;  %v256_v55 = vld [vmem:[%s7754_s1 + $0x138] sm:$0xff] }
   0xd   :  { %29 = vperm.xlu0 %6087, %v6296_v34   ;;  %41 = vperm.xlu1 %6090, %v6296_v34   ;;  %v6362_v56 = vpack.c.bf16 %v242_v49, %v241_v48  ;;  %v273_v57 = vld [vmem:[%s7754_s1 + $0x1c0] sm:$0xff]  ;;  %v274_v58 = vld [vmem:[%s7754_s1 + $0x1c8] sm:$0xff]  ;;  %v243_v61 = vld [vmem:[%s7754_s1 + $0xd0] sm:$0xff]  ;;  %v6387_v63 = vpack.c.bf16 %v256_v55, %v255_v54 }
   0xe   :  { %4943 = vmatpush3.bf16.msra.mxu1 %v6300_v35  ;;  %v225_v59 = vld [vmem:[%s7754_s1 + $0x40] sm:$0xff]  ;;  %v226_v60 = vld [vmem:[%s7754_s1 + $0x48] sm:$0xff]  ;;  %v244_v62 = vld [vmem:[%s7754_s1 + $0xd8] sm:$0xff]  ;;  %v6390_v2 = vpack.c.bf16 %v274_v58, %v273_v57 }
   0xf   :  { %4945 = vmatprep.subr.bf16.mxu1 %v6307_v37  ;;  %4915 = vmatpush3.bf16.msra.mxu0 %v6309_v38  ;;  %7770 = vst [vmem:[#allocation5_spill] sm:$0xff] %v6362_v56  ;;  %v6392_v3 = vpack.c.bf16 %v226_v60, %v225_v59  ;;  %v257_v4 = vld [vmem:[%s7754_s1 + $0x140] sm:$0xff]  ;;  %v258_v5 = vld [vmem:[%s7754_s1 + $0x148] sm:$0xff]  ;;  %v6400_v8 = vpack.c.bf16 %v244_v62, %v243_v61  ;;  %v275_v9 = vld [vmem:[%s7754_s1 + $0x1d0] sm:$0xff] }
  0x10   :  { %4917 = vmatprep.subr.bf16.mxu0 %v6324_v43  ;;  %v276_v12 = vld [vmem:[%s7754_s1 + $0x1d8] sm:$0xff]  ;;  %v227_v13 = vld [vmem:[%s7754_s1 + $0x50] sm:$0xff]  ;;  %v6418_v16 = vpack.c.bf16 %v258_v5, %v257_v4  ;;  %v246_v17 = vld [vmem:[%s7754_s1 + $0xe8] sm:$0xff] }
  0x11   :  { %6092 = vset.pattern.permute.xlu0 %v6152_v53  ;;  %6091 = vset.pattern.permute.xlu1 %v6152_v53  ;;  %v228_v14 = vld [vmem:[%s7754_s1 + $0x58] sm:$0xff]  ;;  %v6428_v18 = vpack.c.bf16 %v276_v12, %v275_v9  ;;  %v259_v21 = vld [vmem:[%s7754_s1 + $0x150] sm:$0xff]  ;;  %v277_v25 = vld [vmem:[%s7754_s1 + $0x1e0] sm:$0xff] }
  0x12   :  { %77 = vperm.xlu0 %6092, %v6296_v34   ;;  %74 = vperm.xlu1 %6091, %v6203_v0   ;;  %7771 = vst [vmem:[#allocation6_spill] sm:$0xff] %v6418_v16  ;;  %v260_v22 = vld [vmem:[%s7754_s1 + $0x158] sm:$0xff]  ;;  %v6437_v23 = vpack.c.bf16 %v228_v14, %v227_v13  ;;  %v278_v27 = vld [vmem:[%s7754_s1 + $0x1e8] sm:$0xff]  ;;  %v229_v29 = vld [vmem:[%s7754_s1 + $0x60] sm:$0xff] }
  0x13   :  { %4947 = vmatpush3.bf16.msra.mxu1 %v6349_v50  ;;  %4919 = vmatpush3.bf16.msra.mxu0 %v6354_v52  ;;  %v230_v31 = vld [vmem:[%s7754_s1 + $0x68] sm:$0xff]  ;;  %v6455_v33 = vpack.c.bf16 %v260_v22, %v259_v21  ;;  %v247_v36 = vld [vmem:[%s7754_s1 + $0xf0] sm:$0xff]  ;;  %v248_v39 = vld [vmem:[%s7754_s1 + $0xf8] sm:$0xff] }
  0x14   :  { %4949 = vmatprep.subr.bf16.mxu1 %v6352_v51  ;;  %4921 = vmatprep.subr.bf16.mxu0 %v6362_v56 }
  0x16   :  { %6095 = vset.pattern.permute.xlu0 %v6153_v7  ;;  %6093 = vset.pattern.permute.xlu1 %v6148_v1  ;;  %v245_v1 = vld [vmem:[%s7754_s1 + $0xe0] sm:$0xff] }
  0x17   :  { %86 = vperm.xlu0 %6095, %v6203_v0   ;;  %65 = vperm.xlu1 %6093, %v6296_v34   ;;  %v6445_v28 = vpack.c.bf16 %v246_v17, %v245_v1 }
  0x18   :  { %4951 = vmatpush3.bf16.msra.mxu1 %v6387_v63  ;;  %4923 = vmatpush3.bf16.msra.mxu0 %v6392_v3 }
  0x19   :  { %4953 = vmatprep.subr.bf16.mxu1 %v6390_v2  ;;  %4925 = vmatprep.subr.bf16.mxu0 %v6400_v8 }
  0x1b   :  { %6098 = vset.pattern.permute.xlu0 %v6154_v32  ;;  %6094 = vset.pattern.permute.xlu1 %v6150_v24 }
  0x1c   :  { %4955 = vmatpush3.bf16.msra.mxu1 %v6418_v16 }
  0x1d   :  { %10 = vsyncpa [#allocation3], 0  ;;  %53 = vperm.xlu1 %6094, %v6296_v34   ;;  %4957 = vmatprep.subr.bf16.mxu1 %v6428_v18  ;;  %v6465_v40 = vpack.c.bf16 %v278_v27, %v277_v25  ;;  %v261_v24 = vld [vmem:[%s7754_s1 + $0x160] sm:$0xff]  ;;  %v262_v41 = vld [vmem:[%s7754_s1 + $0x168] sm:$0xff]  ;;  %v6474_v42 = vpack.c.bf16 %v230_v31, %v229_v29  ;;  %v6484_v46 = vpack.c.bf16 %v248_v39, %v247_v36  ;;  %v6155_v62 = vmov 7   ;;  %s6165_s18 = smov 32  }
  0x1e   :  { %4927 = vmatpush3.bf16.msra.mxu0 %v6437_v23  ;;  %v279_v44 = vld [vmem:[%s7754_s1 + $0x1f0] sm:$0xff]  ;;  %v280_v45 = vld [vmem:[%s7754_s1 + $0x1f8] sm:$0xff]  ;;  %101 = vperm.xlu0 %6098, %v6296_v34   ;;  %v6493_v49 = vpack.c.bf16 %v262_v41, %v261_v24  ;;  %v281_v53 = vld [vmem:[%s7754_s1 + $0x200] sm:$0xff]  ;;  %v6156_v4 = vmov 8   ;;  %v23_v5 = vlaneseq  ;;  %v7759_v13 = vmov 1.0  }
  0x1f   :  { %4929 = vmatprep.subr.bf16.mxu0 %v6445_v28  ;;  %v231_v47 = vld [vmem:[%s7754_s1 + $0x70] sm:$0xff]  ;;  %v232_v48 = vld [vmem:[%s7754_s1 + $0x78] sm:$0xff]  ;;  %v282_v54 = vld [vmem:[%s7754_s1 + $0x208] sm:$0xff]  ;;  %v6502_v55 = vpack.c.bf16 %v280_v45, %v279_v44  ;;  %v6158_v24 = vmov 9  }
  0x20   :  { %4959 = vmatpush3.bf16.msra.mxu1 %v6455_v33  ;;  %v263_v57 = vld [vmem:[%s7754_s1 + $0x170] sm:$0xff]  ;;  %v264_v58 = vld [vmem:[%s7754_s1 + $0x178] sm:$0xff]  ;;  %v6512_v59 = vpack.c.bf16 %v232_v48, %v231_v47  ;;  %v6515_v60 = vpack.c.bf16 %v282_v54, %v281_v53  ;;  %v285_v25 = vld [vmem:[%s7754_s1 + $0x220] sm:$0xff] }
  0x21   :  { %6096 = vset.pattern.permute.xlu1 %v6153_v7  ;;  %4961 = vmatprep.subr.bf16.mxu1 %v6465_v40  ;;  %v6518_v61 = vpack.c.bf16 %v264_v58, %v263_v57  ;;  %v6530_v7 = vand.u32 127, %v23_v5  ;;  %v283_v14 = vld [vmem:[%s7754_s1 + $0x210] sm:$0xff]  ;;  %v284_v1 = vld [vmem:[%s7754_s1 + $0x218] sm:$0xff]  ;;  %v286_v27 = vld [vmem:[%s7754_s1 + $0x228] sm:$0xff] }
  0x22   :  { %89 = vperm.xlu1 %6096, %v6296_v34   ;;  %4931 = vmatpush3.bf16.msra.mxu0 %v6474_v42  ;;  %v6556_v22 = vpack.c.bf16 %v284_v1, %v283_v14  ;;  %v6576_v29 = vpack.c.bf16 %v286_v27, %v285_v25  ;;  %v287_v36 = vld [vmem:[%s7754_s1 + $0x230] sm:$0xff]  ;;  %v288_v39 = vld [vmem:[%s7754_s1 + $0x238] sm:$0xff]  ;;  %v289_v44 = vld [vmem:[%s7754_s1 + $0x240] sm:$0xff] }
  0x23   :  { %4933 = vmatprep.subr.bf16.mxu0 %v6484_v46  ;;  %6100 = vset.pattern.permute.xlu0 %v6156_v4  ;;  %v6598_v41 = vpack.c.bf16 %v288_v39, %v287_v36  ;;  %v290_v45 = vld [vmem:[%s7754_s1 + $0x248] sm:$0xff]  ;;  %v291_v54 = vld [vmem:[%s7754_s1 + $0x250] sm:$0xff]  ;;  %v292_v57 = vld [vmem:[%s7754_s1 + $0x258] sm:$0xff] }
  0x24   :  { %4963 = vmatpush3.bf16.msra.mxu1 %v6493_v49  ;;  %122 = vperm.xlu0 %6100, %v6203_v0   ;;  %v6617_v53 = vpack.c.bf16 %v290_v45, %v289_v44  ;;  %v294_v5 = vld [vmem:[%s7754_s1 + $0x268] sm:$0xff]  ;;  %v296_v25 = vld [vmem:[%s7754_s1 + $0x278] sm:$0xff] }
  0x25   :  { %4965 = vmatprep.subr.bf16.mxu1 %v6502_v55  ;;  %7772 = vst [vmem:[#allocation7_spill] sm:$0xff] %v6598_v41 }
  0x26   :  { %4935 = vmatpush3.bf16.msra.mxu0 %v6512_v59  ;;  %6097 = vset.pattern.permute.xlu1 %v6154_v32 }
  0x27   :  { %98 = vperm.xlu1 %6097, %v6203_v0   ;;  %4969 = vmatprep.subr.bf16.mxu0 %v6515_v60 }
  0x28   :  { %4967 = vmatpush3.bf16.msra.mxu1 %v6518_v61  ;;  %6103 = vset.pattern.permute.xlu0 %v6158_v24 }
  0x29   :  { %5001 = vmatprep.subr.bf16.mxu1 %v6217_v6  ;;  %137 = vperm.xlu0 %6103, %v6296_v34  }
  0x2b   :  { %6099 = vset.pattern.permute.xlu1 %v6155_v62  ;;  %v6636_v62 = vpack.c.bf16 %v292_v57, %v291_v54  ;;  %v6164_v57 = vmov 15  }
  0x2c   :  { %110 = vperm.xlu1 %6099, %v6203_v0   ;;  %v7812_v48 = vld [vmem:[#allocation7_spill] sm:$0xff] }
  0x30   :  { %113 = vperm.xlu1 %6099, %v6296_v34  }
  0x34   :  { %6101 = vset.pattern.permute.xlu1 %v6156_v4  ;;  %v293_v4 = vld [vmem:[%s7754_s1 + $0x260] sm:$0xff] }
  0x35   :  { %125 = vperm.xlu1 %6101, %v6296_v34   ;;  %v6654_v1 = vpack.c.bf16 %v294_v5, %v293_v4 }
  0x39   :  { %6102 = vset.pattern.permute.xlu1 %v6158_v24 }
  0x3a   :  { %134 = vperm.xlu1 %6102, %v6203_v0  }
  0x81   :  { %v6532_v9 = vpop.permute.xlu0 %38  ;;  %v6534_v12 = vpop.permute.xlu1 %62 }
  0x82   :  { %vm67_vm0 = vcmp.eq.s32.totalorder %v6534_v12, %v6530_v7  ;;  %vm43_vm1 = vcmp.eq.s32.totalorder %v6532_v9, %v6530_v7  ;;  %v6159_v9 = vmov 10  }
  0x83   :  { %3215 = vmatprep.mubr.msk.f32.mxu0 %vm43_vm1, %v7759_v13  ;;  %3219 = vmatprep.mubr.msk.f32.mxu1 %vm67_vm0, %v7759_v13 }
  0x84   :  { %6104 = vset.pattern.permute.xlu1 %v6159_v9 }
  0x85   :  { %146 = vperm.xlu1 %6104, %v6203_v0  }
  0x87   :  { %v6554_v17 = vpop.permute.xlu1 %50  ;;  %v27_v21 = vpop.permute.xlu0 %26 }
  0x88   :  { %vm55_vm2 = vcmp.eq.s32.totalorder %v6554_v17, %v6530_v7  ;;  %vm31_vm3 = vcmp.eq.s32.totalorder %v27_v21, %v6530_v7  ;;  %v295_v21 = vld [vmem:[%s7754_s1 + $0x270] sm:$0xff]  ;;  %v7799_v17 = vmov 0 }
  0x89   :  { %3216 = vmatmul.mubr.msk.f32.vlgmr.msra.gmra.mrb[0].mxu0 %vm31_vm3, %v7759_v13  ;;  %3220 = vmatmul.mubr.msk.f32.vlgmr.msra.gmra.mrb[0].mxu1 %vm55_vm2, %v7759_v13  ;;  %v6675_v27 = vpack.c.bf16 %v296_v25, %v295_v21  ;;  %v6162_v25 = vmov 13  }
  0x8a   :  { %4971 = vmatpush3.bf16.msra.mxu0 %v6515_v60  ;;  %5003 = vmatpush3.bf16.msra.mxu1 %v6230_v11 }
  0x8b   :  { %5005 = vmatprep.subr.bf16.mxu1 %v6255_v19  ;;  %4973 = vmatprep.subr.bf16.mxu0 %v6556_v22 }
  0x8c   :  { %v30_v31 = vpop.permute.xlu0 %29  ;;  %v6578_v32 = vpop.permute.xlu1 %41  ;;  %149 = vperm.xlu1 %6104, %v6296_v34  }
  0x8d   :  { %vm44_vm4 = vcmp.eq.s32.totalorder %v6578_v32, %v6530_v7  ;;  %vm32_vm5 = vcmp.eq.s32.totalorder %v30_v31, %v6530_v7 }
  0x8e   :  { %4975 = vmatpush3.bf16.msra.mxu0 %v6556_v22  ;;  %5007 = vmatpush3.bf16.msra.mxu1 %v6269_v26 }
  0x8f   :  { %3217 = vmatprep.mubr.msk.f32.mxu0 %vm44_vm4, %v7759_v13  ;;  %4977 = vmatprep.subr.bf16.mxu0 %v6576_v29 }
  0x90   :  { %3218 = vmatmul.mubr.msk.f32.gmra.mrb[2].mxu0 %vm32_vm5, %v7759_v13  ;;  %5009 = vmatprep.subr.bf16.mxu1 %v6282_v30 }
  0x91   :  { %v75_v47 = vpop.permute.xlu1 %74  ;;  %v78_v31 = vpop.permute.xlu0 %77 }
  0x92   :  { %4979 = vmatpush3.bf16.msra.mxu0 %v6576_v29  ;;  %5011 = vmatpush3.bf16.msra.mxu1 %v6309_v38  ;;  %vm6611_vm6 = vcmp.eq.s32.totalorder %v75_v47, %v6530_v7  ;;  %vm6685_vm9 = vcmp.eq.s32.totalorder %v78_v31, %v6530_v7  ;;  %v6160_v47 = vmov 11  }
  0x93   :  { %4981 = vmatprep.subr.bf16.mxu0 %v6598_v41  ;;  %5013 = vmatprep.subr.bf16.mxu1 %v6324_v43 }
  0x94   :  { %4505 = vmatprep.mubr.msk.f32.mxu0 %vm6611_vm6, %v7759_v13  ;;  %6105 = vset.pattern.permute.xlu0 %v6160_v47 }
  0x95   :  { %6106 = vset.pattern.permute.xlu1 %v6160_v47  ;;  %158 = vperm.xlu0 %6105, %v6203_v0  }
  0x96   :  { %4983 = vmatpush3.bf16.msra.mxu0 %v6598_v41  ;;  %5015 = vmatpush3.bf16.msra.mxu1 %v6354_v52  ;;  %v6630_v58 = vpop.permute.xlu1 %65  ;;  %v87_v39 = vpop.permute.xlu0 %86 }
  0x97   :  { %vm68_vm7 = vcmp.eq.s32.totalorder %v6630_v58, %v6530_v7  ;;  %4985 = vmatprep.subr.bf16.mxu0 %v6617_v53  ;;  %5017 = vmatprep.subr.bf16.mxu1 %v6362_v56  ;;  %vm6708_vm10 = vcmp.eq.s32.totalorder %v87_v39, %v6530_v7 }
  0x98   :  { %3221 = vmatprep.mubr.msk.f32.mxu1 %vm68_vm7, %v7759_v13  ;;  %161 = vperm.xlu1 %6106, %v6296_v34  }
  0x9a   :  { %4987 = vmatpush3.bf16.msra.mxu0 %v6617_v53  ;;  %5019 = vmatpush3.bf16.msra.mxu1 %v6392_v3 }
  0x9b   :  { %4989 = vmatprep.subr.bf16.mxu0 %v6636_v62  ;;  %5021 = vmatprep.subr.bf16.mxu1 %v6400_v8 }
  0x9c   :  { %v6650_v14 = vpop.permute.xlu1 %53 }
  0x9d   :  { %vm56_vm8 = vcmp.eq.s32.totalorder %v6650_v14, %v6530_v7  ;;  %v102_v54 = vpop.permute.xlu0 %101  ;;  %v6161_v14 = vmov 12  }
  0x9e   :  { %3222 = vmatmul.mubr.msk.f32.gmra.mrb[2].mxu1 %vm56_vm8, %v7759_v13  ;;  %4991 = vmatpush3.bf16.msra.mxu0 %v6636_v62  ;;  %vm6874_vm13 = vcmp.eq.s32.totalorder %v102_v54, %v6530_v7 }
  0x9f   :  { %5023 = vmatpush3.bf16.msra.mxu1 %v6437_v23  ;;  %3225 = vmatprep.mubr.msk.f32.mxu1 %vm55_vm2, %v7759_v13 }
  0xa0   :  { %4993 = vmatprep.subr.bf16.mxu0 %v6654_v1  ;;  %5025 = vmatprep.subr.bf16.mxu1 %v6445_v28 }
  0xa1   :  { %v90_v32 = vpop.permute.xlu1 %89  ;;  %6107 = vset.pattern.permute.xlu1 %v6161_v14  ;;  %6108 = vset.pattern.permute.xlu0 %v6161_v14 }
  0xa2   :  { %4995 = vmatpush3.bf16.msra.mxu0 %v6654_v1  ;;  %vm6749_vm11 = vcmp.eq.s32.totalorder %v90_v32, %v6530_v7  ;;  %170 = vperm.xlu1 %6107, %v6203_v0  }
  0xa3   :  { %5027 = vmatpush3.bf16.msra.mxu1 %v6474_v42  ;;  %4997 = vmatprep.subr.bf16.mxu0 %v6675_v27  ;;  %v123_v21 = vpop.permute.xlu0 %122 }
  0xa4   :  { %5029 = vmatprep.subr.bf16.mxu1 %v6484_v46  ;;  %173 = vperm.xlu0 %6108, %v6296_v34  }
  0xa6   :  { %4999 = vmatpush3.bf16.msra.mxu0 %v6675_v27  ;;  %v99_v45 = vpop.permute.xlu1 %98  ;;  %6109 = vset.pattern.permute.xlu1 %v6162_v25 }
  0xa7   :  { %5031 = vmatpush3.bf16.msra.mxu1 %v6512_v59  ;;  %5033 = vmatprep.subr.bf16.mxu0 %v6228_v10  ;;  %vm6826_vm12 = vcmp.eq.s32.totalorder %v99_v45, %v6530_v7 }
  0xa8   :  { %5065 = vmatprep.subr.bf16.mxu1 %v6515_v60  ;;  %182 = vperm.xlu1 %6109, %v6203_v0  }
  0xa9   :  { %4506 = vmatmul.mubr.msk.f32.vlgmr.msra.gmra.mrb[4].mxu0 %vm6685_vm9, %v7759_v13 }
  0xaa   :  { %3226 = vmatmul.mubr.msk.f32.vlgmr.msra.gmra.mrb[4].mxu1 %vm43_vm1, %v7759_v13  ;;  %5035 = vmatpush3.bf16.msra.mxu0 %v6242_v15 }
  0xab   :  { %3229 = vmatprep.mubr.msk.f32.mxu0 %vm6611_vm6, %v7759_v13  ;;  %5067 = vmatpush3.bf16.msra.mxu1 %v6515_v60  ;;  %v111_v4 = vpop.permute.xlu1 %110 }
  0xac   :  { %3227 = vmatprep.mubr.msk.f32.mxu1 %vm56_vm8, %v7759_v13  ;;  %5037 = vmatprep.subr.bf16.mxu0 %v6257_v20  ;;  %vm6896_vm14 = vcmp.eq.s32.totalorder %v111_v4, %v6530_v7 }
  0xad   :  { %5069 = vmatprep.subr.bf16.mxu1 %v6556_v22  ;;  %185 = vperm.xlu1 %6109, %v6296_v34  }
  0xae   :  { %3228 = vmatmul.mubr.msk.f32.gmra.mrb[6].mxu1 %vm44_vm4, %v7759_v13  ;;  %5039 = vmatpush3.bf16.msra.mxu0 %v6300_v35 }
  0xaf   :  { %4540 = vmatprep.mubr.msk.f32.mxu1 %vm6708_vm10, %v7759_v13  ;;  %5071 = vmatpush3.bf16.msra.mxu1 %v6556_v22  ;;  %v114_v12 = vpop.permute.xlu1 %113 }
  0xb0   :  { %5041 = vmatprep.subr.bf16.mxu0 %v6307_v37  ;;  %5073 = vmatprep.subr.bf16.mxu1 %v6576_v29  ;;  %vm6936_vm15 = vcmp.eq.s32.totalorder %v114_v12, %v6530_v7 }
  0xb2   :  { %5043 = vmatpush3.bf16.msra.mxu0 %v6349_v50 }
  0xb3   :  { %5075 = vmatpush3.bf16.msra.mxu1 %v6576_v29  ;;  %5045 = vmatprep.subr.bf16.mxu0 %v6352_v51 }
  0xb4   :  { %5077 = vmatprep.subr.bf16.mxu1 %v6598_v41  ;;  %v126_v4 = vpop.permute.xlu1 %125 }
  0xb5   :  { %vm7056_vm1 = vcmp.eq.s32.totalorder %v126_v4, %v6530_v7 }
  0xb6   :  { %5047 = vmatpush3.bf16.msra.mxu0 %v6387_v63 }
  0xb7   :  { %5079 = vmatpush3.bf16.msra.mxu1 %v6598_v41  ;;  %5049 = vmatprep.subr.bf16.mxu0 %v6390_v2 }
  0xb8   :  { %5081 = vmatprep.subr.bf16.mxu1 %v6617_v53 }
  0xb9   :  { %v135_v14 = vpop.permute.xlu1 %134 }
  0xba   :  { %5051 = vmatpush3.bf16.msra.mxu0 %v6418_v16 }
  0xbb   :  { %5083 = vmatpush3.bf16.msra.mxu1 %v6617_v53  ;;  %5053 = vmatprep.subr.bf16.mxu0 %v6428_v18 }
  0xbc   :  { %5085 = vmatprep.subr.bf16.mxu1 %v6636_v62 }
  0xbe   :  { %5055 = vmatpush3.bf16.msra.mxu0 %v6455_v33 }
  0xbf   :  { %5087 = vmatpush3.bf16.msra.mxu1 %v6636_v62  ;;  %5057 = vmatprep.subr.bf16.mxu0 %v6465_v40 }
  0xc0   :  { %5089 = vmatprep.subr.bf16.mxu1 %v6654_v1 }
  0xc2   :  { %5059 = vmatpush3.bf16.msra.mxu0 %v6493_v49 }
  0xc3   :  { %5091 = vmatpush3.bf16.msra.mxu1 %v6654_v1  ;;  %5061 = vmatprep.subr.bf16.mxu0 %v6502_v55 }
  0xc4   :  { %5093 = vmatprep.subr.bf16.mxu1 %v6675_v27 }
  0xc6   :  { %5063 = vmatpush3.bf16.msra.mxu0 %v6518_v61 }
  0xc7   :  { %5095 = vmatpush3.bf16.msra.mxu1 %v6675_v27  ;;  %5097 = vmatprep.subr.bf16.mxu0 %v6217_v6 }
  0xc8   :  { %5129 = vmatprep.subr.bf16.mxu1 %v6228_v10 }
  0xc9   :  { %3230 = vmatmul.mubr.msk.f32.vlgmr.msra.gmra.mrb[6].mxu0 %vm67_vm0, %v7759_v13 }
  0xca   :  { %3231 = vmatprep.mubr.msk.f32.mxu0 %vm6685_vm9, %v7759_v13  ;;  %4541 = vmatmul.mubr.msk.f32.vlgmr.msra.gmra.mrb[8].mxu1 %vm6749_vm11, %v7759_v13 }
  0xcb   :  { %5099 = vmatpush3.bf16.msra.mxu0 %v6230_v11  ;;  %5131 = vmatpush3.bf16.msra.mxu1 %v6242_v15 }
  0xcc   :  { %5101 = vmatprep.subr.bf16.mxu0 %v6255_v19  ;;  %5133 = vmatprep.subr.bf16.mxu1 %v6257_v20 }
  0xcd   :  { %3232 = vmatmul.mubr.msk.f32.gmra.mrb[8].mxu0 %vm68_vm7, %v7759_v13  ;;  %3239 = vmatprep.mubr.msk.f32.mxu1 %vm6708_vm10, %v7759_v13 }
  0xce   :  { %3235 = vmatprep.mubr.msk.f32.mxu0 %vm67_vm0, %v7759_v13 }
  0xcf   :  { %5103 = vmatpush3.bf16.msra.mxu0 %v6269_v26  ;;  %5135 = vmatpush3.bf16.msra.mxu1 %v6300_v35 }
  0xd0   :  { %5105 = vmatprep.subr.bf16.mxu0 %v6282_v30  ;;  %5137 = vmatprep.subr.bf16.mxu1 %v6307_v37 }
  0xd3   :  { %5107 = vmatpush3.bf16.msra.mxu0 %v6309_v38  ;;  %5139 = vmatpush3.bf16.msra.mxu1 %v6349_v50 }
  0xd4   :  { %5109 = vmatprep.subr.bf16.mxu0 %v6324_v43  ;;  %5141 = vmatprep.subr.bf16.mxu1 %v6352_v51 }
  0xd7   :  { %5111 = vmatpush3.bf16.msra.mxu0 %v6354_v52  ;;  %5143 = vmatpush3.bf16.msra.mxu1 %v6387_v63 }
  0xd8   :  { %5113 = vmatprep.subr.bf16.mxu0 %v6362_v56  ;;  %5145 = vmatprep.subr.bf16.mxu1 %v6390_v2 }
  0xdb   :  { %5115 = vmatpush3.bf16.msra.mxu0 %v6392_v3  ;;  %5147 = vmatpush3.bf16.msra.mxu1 %v6418_v16 }
  0xdc   :  { %5117 = vmatprep.subr.bf16.mxu0 %v6400_v8  ;;  %5149 = vmatprep.subr.bf16.mxu1 %v6428_v18 }
  0xdf   :  { %5119 = vmatpush3.bf16.msra.mxu0 %v6437_v23  ;;  %5151 = vmatpush3.bf16.msra.mxu1 %v6455_v33 }
  0xe0   :  { %5121 = vmatprep.subr.bf16.mxu0 %v6445_v28  ;;  %5153 = vmatprep.subr.bf16.mxu1 %v6465_v40 }
  0xe3   :  { %5123 = vmatpush3.bf16.msra.mxu0 %v6474_v42  ;;  %5155 = vmatpush3.bf16.msra.mxu1 %v6493_v49 }
  0xe4   :  { %5125 = vmatprep.subr.bf16.mxu0 %v6484_v46  ;;  %5157 = vmatprep.subr.bf16.mxu1 %v6502_v55 }
  0xe7   :  { %5127 = vmatpush3.bf16.msra.mxu0 %v6512_v59  ;;  %5159 = vmatpush3.bf16.msra.mxu1 %v6518_v61 }
  0xe8   :  { %5161 = vmatprep.subr.bf16.mxu0 %v6515_v60  ;;  %5193 = vmatprep.subr.bf16.mxu1 %v6217_v6 }
  0xea   :  { %3236 = vmatmul.mubr.msk.f32.vlgmr.msra.gmra.mrb[10].mxu0 %vm55_vm2, %v7759_v13  ;;  %3240 = vmatmul.mubr.msk.f32.vlgmr.msra.gmra.mrb[10].mxu1 %vm6611_vm6, %v7759_v13  ;;  %vm7077_vm2 = vcmp.eq.s32.totalorder %v135_v14, %v6530_v7 }
  0xeb   :  { %3237 = vmatprep.mubr.msk.f32.mxu0 %vm68_vm7, %v7759_v13  ;;  %3241 = vmatprep.mubr.msk.f32.mxu1 %vm6749_vm11, %v7759_v13 }
  0xec   :  { %5163 = vmatpush3.bf16.msra.mxu0 %v6515_v60  ;;  %5195 = vmatpush3.bf16.msra.mxu1 %v6230_v11 }
  0xed   :  { %5165 = vmatprep.subr.bf16.mxu0 %v6556_v22  ;;  %5197 = vmatprep.subr.bf16.mxu1 %v6255_v19 }
  0xee   :  { %3238 = vmatmul.mubr.msk.f32.gmra.mrb[12].mxu0 %vm56_vm8, %v7759_v13  ;;  %3242 = vmatmul.mubr.msk.f32.gmra.mrb[12].mxu1 %vm6685_vm9, %v7759_v13 }
  0xef   :  { %3245 = vmatprep.mubr.msk.f32.mxu1 %vm6611_vm6, %v7759_v13  ;;  %4575 = vmatprep.mubr.msk.f32.mxu0 %vm6826_vm12, %v7759_v13 }
  0xf0   :  { %5167 = vmatpush3.bf16.msra.mxu0 %v6556_v22  ;;  %5199 = vmatpush3.bf16.msra.mxu1 %v6269_v26 }
  0xf1   :  { %5169 = vmatprep.subr.bf16.mxu0 %v6576_v29  ;;  %5201 = vmatprep.subr.bf16.mxu1 %v6282_v30 }
  0xf4   :  { %5171 = vmatpush3.bf16.msra.mxu0 %v6576_v29  ;;  %5203 = vmatpush3.bf16.msra.mxu1 %v6309_v38 }
  0xf5   :  { %5173 = vmatprep.subr.bf16.mxu0 %v6598_v41  ;;  %5205 = vmatprep.subr.bf16.mxu1 %v6324_v43 }
  0xf8   :  { %5175 = vmatpush3.bf16.msra.mxu0 %v6598_v41  ;;  %5207 = vmatpush3.bf16.msra.mxu1 %v6354_v52 }
  0xf9   :  { %5177 = vmatprep.subr.bf16.mxu0 %v6617_v53  ;;  %5209 = vmatprep.subr.bf16.mxu1 %v6362_v56 }
  0xfc   :  { %5179 = vmatpush3.bf16.msra.mxu0 %v6617_v53  ;;  %5211 = vmatpush3.bf16.msra.mxu1 %v6392_v3 }
  0xfd   :  { %5181 = vmatprep.subr.bf16.mxu0 %v6636_v62  ;;  %5213 = vmatprep.subr.bf16.mxu1 %v6400_v8 }
 0x100   :  { %5183 = vmatpush3.bf16.msra.mxu0 %v6636_v62  ;;  %5215 = vmatpush3.bf16.msra.mxu1 %v6437_v23 }
 0x101   :  { %5185 = vmatprep.subr.bf16.mxu0 %v6654_v1  ;;  %5217 = vmatprep.subr.bf16.mxu1 %v6445_v28 }
 0x104   :  { %5187 = vmatpush3.bf16.msra.mxu0 %v6654_v1  ;;  %5219 = vmatpush3.bf16.msra.mxu1 %v6474_v42 }
 0x105   :  { %5189 = vmatprep.subr.bf16.mxu0 %v6675_v27  ;;  %5221 = vmatprep.subr.bf16.mxu1 %v6484_v46 }
 0x108   :  { %5191 = vmatpush3.bf16.msra.mxu0 %v6675_v27  ;;  %5223 = vmatpush3.bf16.msra.mxu1 %v6512_v59 }
 0x109   :  { %5225 = vmatprep.subr.bf16.mxu0 %v6228_v10  ;;  %5257 = vmatprep.subr.bf16.mxu1 %v6515_v60 }
 0x10b   :  { %4576 = vmatmul.mubr.msk.f32.vlgmr.msra.gmra.mrb[14].mxu0 %vm6874_vm13, %v7759_v13  ;;  %3246 = vmatmul.mubr.msk.f32.vlgmr.msra.gmra.mrb[14].mxu1 %vm67_vm0, %v7759_v13  ;;  %vm7009_vm0 = vcmp.eq.s32.totalorder %v123_v21, %v6530_v7  ;;  %v7793_v21 = vmov 0 }
 0x10c   :  { %3247 = vmatprep.mubr.msk.f32.mxu1 %vm6685_vm9, %v7759_v13  ;;  %5227 = vmatpush3.bf16.msra.mxu0 %v6242_v15  ;;  %v7794_v21 = vsel %vm7077_vm2, 4294967295, %v7793_v21 }
 0x10d   :  { %3249 = vmatprep.mubr.msk.f32.mxu0 %vm6826_vm12, %v7759_v13  ;;  %5259 = vmatpush3.bf16.msra.mxu1 %v6515_v60  ;;  %7795 = vst [vmem:[#allocation8_spill] sm:$0xff] %v7794_v21 }
 0x10e   :  { %5229 = vmatprep.subr.bf16.mxu0 %v6257_v20  ;;  %5261 = vmatprep.subr.bf16.mxu1 %v6556_v22 }
 0x10f   :  { %3248 = vmatmul.mubr.msk.f32.gmra.mrb[16].mxu1 %vm68_vm7, %v7759_v13 }
 0x110   :  { %5231 = vmatpush3.bf16.msra.mxu0 %v6300_v35  ;;  %4610 = vmatprep.mubr.msk.f32.mxu1 %vm6896_vm14, %v7759_v13 }
 0x111   :  { %5263 = vmatpush3.bf16.msra.mxu1 %v6556_v22  ;;  %5233 = vmatprep.subr.bf16.mxu0 %v6307_v37 }
 0x112   :  { %5265 = vmatprep.subr.bf16.mxu1 %v6576_v29 }
 0x114   :  { %5235 = vmatpush3.bf16.msra.mxu0 %v6349_v50 }
 0x115   :  { %5267 = vmatpush3.bf16.msra.mxu1 %v6576_v29  ;;  %5237 = vmatprep.subr.bf16.mxu0 %v6352_v51 }
 0x116   :  { %5269 = vmatprep.subr.bf16.mxu1 %v6598_v41 }
 0x118   :  { %5239 = vmatpush3.bf16.msra.mxu0 %v6387_v63 }
 0x119   :  { %5271 = vmatpush3.bf16.msra.mxu1 %v6598_v41  ;;  %5241 = vmatprep.subr.bf16.mxu0 %v6390_v2 }
 0x11a   :  { %5273 = vmatprep.subr.bf16.mxu1 %v6617_v53 }
 0x11c   :  { %5243 = vmatpush3.bf16.msra.mxu0 %v6418_v16 }
 0x11d   :  { %5275 = vmatpush3.bf16.msra.mxu1 %v6617_v53  ;;  %5245 = vmatprep.subr.bf16.mxu0 %v6428_v18 }
 0x11e   :  { %5277 = vmatprep.subr.bf16.mxu1 %v6636_v62 }
 0x120   :  { %5247 = vmatpush3.bf16.msra.mxu0 %v6455_v33 }
 0x121   :  { %5279 = vmatpush3.bf16.msra.mxu1 %v6636_v62  ;;  %5249 = vmatprep.subr.bf16.mxu0 %v6465_v40 }
 0x122   :  { %5281 = vmatprep.subr.bf16.mxu1 %v6654_v1 }
 0x124   :  { %5251 = vmatpush3.bf16.msra.mxu0 %v6493_v49 }
 0x125   :  { %5283 = vmatpush3.bf16.msra.mxu1 %v6654_v1  ;;  %5253 = vmatprep.subr.bf16.mxu0 %v6502_v55 }
 0x126   :  { %5285 = vmatprep.subr.bf16.mxu1 %v6675_v27 }
 0x128   :  { %5255 = vmatpush3.bf16.msra.mxu0 %v6518_v61 }
 0x129   :  { %5287 = vmatpush3.bf16.msra.mxu1 %v6675_v27  ;;  %5289 = vmatprep.subr.bf16.mxu0 %v6217_v6 }
 0x12a   :  { %5321 = vmatprep.subr.bf16.mxu1 %v6228_v10 }
 0x12b   :  { %3250 = vmatmul.mubr.msk.f32.vlgmr.msra.gmra.mrb[16].mxu0 %vm6708_vm10, %v7759_v13 }
 0x12c   :  { %3251 = vmatprep.mubr.msk.f32.mxu0 %vm6874_vm13, %v7759_v13  ;;  %4611 = vmatmul.mubr.msk.f32.vlgmr.msra.gmra.mrb[18].mxu1 %vm6936_vm15, %v7759_v13 }
 0x12d   :  { %5291 = vmatpush3.bf16.msra.mxu0 %v6230_v11  ;;  %5323 = vmatpush3.bf16.msra.mxu1 %v6242_v15 }
 0x12e   :  { %5293 = vmatprep.subr.bf16.mxu0 %v6255_v19  ;;  %5325 = vmatprep.subr.bf16.mxu1 %v6257_v20 }
 0x12f   :  { %3252 = vmatmul.mubr.msk.f32.gmra.mrb[18].mxu0 %vm6749_vm11, %v7759_v13  ;;  %3259 = vmatprep.mubr.msk.f32.mxu1 %vm6896_vm14, %v7759_v13 }
 0x130   :  { %3255 = vmatprep.mubr.msk.f32.mxu0 %vm6708_vm10, %v7759_v13 }
 0x131   :  { %5295 = vmatpush3.bf16.msra.mxu0 %v6269_v26  ;;  %5327 = vmatpush3.bf16.msra.mxu1 %v6300_v35 }
 0x132   :  { %5297 = vmatprep.subr.bf16.mxu0 %v6282_v30  ;;  %5329 = vmatprep.subr.bf16.mxu1 %v6307_v37 }
 0x135   :  { %5299 = vmatpush3.bf16.msra.mxu0 %v6309_v38  ;;  %5331 = vmatpush3.bf16.msra.mxu1 %v6349_v50 }
 0x136   :  { %5301 = vmatprep.subr.bf16.mxu0 %v6324_v43  ;;  %5333 = vmatprep.subr.bf16.mxu1 %v6352_v51 }
 0x139   :  { %5303 = vmatpush3.bf16.msra.mxu0 %v6354_v52  ;;  %5335 = vmatpush3.bf16.msra.mxu1 %v6387_v63 }
 0x13a   :  { %5305 = vmatprep.subr.bf16.mxu0 %v6362_v56  ;;  %5337 = vmatprep.subr.bf16.mxu1 %v6390_v2 }
 0x13d   :  { %5307 = vmatpush3.bf16.msra.mxu0 %v6392_v3  ;;  %5339 = vmatpush3.bf16.msra.mxu1 %v6418_v16 }
 0x13e   :  { %5309 = vmatprep.subr.bf16.mxu0 %v6400_v8  ;;  %5341 = vmatprep.subr.bf16.mxu1 %v6428_v18 }
 0x141   :  { %5311 = vmatpush3.bf16.msra.mxu0 %v6437_v23  ;;  %5343 = vmatpush3.bf16.msra.mxu1 %v6455_v33 }
 0x142   :  { %5313 = vmatprep.subr.bf16.mxu0 %v6445_v28  ;;  %5345 = vmatprep.subr.bf16.mxu1 %v6465_v40 }
 0x145   :  { %5315 = vmatpush3.bf16.msra.mxu0 %v6474_v42  ;;  %5347 = vmatpush3.bf16.msra.mxu1 %v6493_v49 }
 0x146   :  { %5317 = vmatprep.subr.bf16.mxu0 %v6484_v46  ;;  %5349 = vmatprep.subr.bf16.mxu1 %v6502_v55 }
 0x149   :  { %5319 = vmatpush3.bf16.msra.mxu0 %v6512_v59  ;;  %5351 = vmatpush3.bf16.msra.mxu1 %v6518_v61 }
 0x14a   :  { %5353 = vmatprep.subr.bf16.mxu0 %v6515_v60  ;;  %5385 = vmatprep.subr.bf16.mxu1 %v6217_v6 }
 0x14c   :  { %3256 = vmatmul.mubr.msk.f32.vlgmr.msra.gmra.mrb[20].mxu0 %vm6611_vm6, %v7759_v13  ;;  %3260 = vmatmul.mubr.msk.f32.vlgmr.msra.gmra.mrb[20].mxu1 %vm6826_vm12, %v7759_v13 }
 0x14d   :  { %3257 = vmatprep.mubr.msk.f32.mxu0 %vm6749_vm11, %v7759_v13  ;;  %3261 = vmatprep.mubr.msk.f32.mxu1 %vm6936_vm15, %v7759_v13 }
 0x14e   :  { %5355 = vmatpush3.bf16.msra.mxu0 %v6515_v60  ;;  %5387 = vmatpush3.bf16.msra.mxu1 %v6230_v11 }
 0x14f   :  { %5357 = vmatprep.subr.bf16.mxu0 %v6556_v22  ;;  %5389 = vmatprep.subr.bf16.mxu1 %v6255_v19 }
 0x150   :  { %3258 = vmatmul.mubr.msk.f32.gmra.mrb[22].mxu0 %vm6685_vm9, %v7759_v13  ;;  %3262 = vmatmul.mubr.msk.f32.gmra.mrb[22].mxu1 %vm6874_vm13, %v7759_v13 }
 0x151   :  { %3265 = vmatprep.mubr.msk.f32.mxu1 %vm6826_vm12, %v7759_v13  ;;  %4645 = vmatprep.mubr.msk.f32.mxu0 %vm7009_vm0, %v7759_v13 }
 0x152   :  { %5359 = vmatpush3.bf16.msra.mxu0 %v6556_v22  ;;  %5391 = vmatpush3.bf16.msra.mxu1 %v6269_v26 }
 0x153   :  { %5361 = vmatprep.subr.bf16.mxu0 %v6576_v29  ;;  %5393 = vmatprep.subr.bf16.mxu1 %v6282_v30 }
 0x156   :  { %5363 = vmatpush3.bf16.msra.mxu0 %v6576_v29  ;;  %5395 = vmatpush3.bf16.msra.mxu1 %v6309_v38 }
 0x157   :  { %5365 = vmatprep.subr.bf16.mxu0 %v6598_v41  ;;  %5397 = vmatprep.subr.bf16.mxu1 %v6324_v43 }
 0x15a   :  { %5367 = vmatpush3.bf16.msra.mxu0 %v6598_v41  ;;  %5399 = vmatpush3.bf16.msra.mxu1 %v6354_v52 }
 0x15b   :  { %5369 = vmatprep.subr.bf16.mxu0 %v6617_v53  ;;  %5401 = vmatprep.subr.bf16.mxu1 %v6362_v56 }
 0x15c   :  { %v3371_v31 = vpop.f32.mrb[0].mxu0  ;;  %v3409_v0 = vpop.f32.mrb[0].mxu1 }
 0x15d   :  { %v3372_v36 = vpop.f32.mrb[1].mxu0  ;;  %v3410_v39 = vpop.f32.mrb[1].mxu1 }
 0x15e   :  { %5371 = vmatpush3.bf16.msra.mxu0 %v6617_v53  ;;  %5403 = vmatpush3.bf16.msra.mxu1 %v6392_v3  ;;  %v3373_v9 = vadd.f32 %v3372_v36, %v3371_v31  ;;  %v3411_v32 = vadd.f32 %v3410_v39, %v3409_v0 }
 0x15f   :  { %5373 = vmatprep.subr.bf16.mxu0 %v6636_v62  ;;  %5405 = vmatprep.subr.bf16.mxu1 %v6400_v8 }
 0x160   :  { %v439_v34 = vadd.f32 %v3411_v32, %v3373_v9 }
 0x162   :  { %5375 = vmatpush3.bf16.msra.mxu0 %v6636_v62  ;;  %5407 = vmatpush3.bf16.msra.mxu1 %v6437_v23 }
 0x163   :  { %5377 = vmatprep.subr.bf16.mxu0 %v6654_v1  ;;  %5409 = vmatprep.subr.bf16.mxu1 %v6445_v28  ;;  %v3374_v45 = vpop.f32.mrb[2].mxu0 }
 0x164   :  { %v3375_v47 = vpop.f32.mrb[3].mxu0 }
 0x165   :  { %v3376_v54 = vadd.f32 %v3375_v47, %v3374_v45 }
 0x166   :  { %5379 = vmatpush3.bf16.msra.mxu0 %v6654_v1  ;;  %5411 = vmatpush3.bf16.msra.mxu1 %v6474_v42 }
 0x167   :  { %5381 = vmatprep.subr.bf16.mxu0 %v6675_v27  ;;  %5413 = vmatprep.subr.bf16.mxu1 %v6484_v46 }
 0x16a   :  { %5383 = vmatpush3.bf16.msra.mxu0 %v6675_v27  ;;  %5415 = vmatpush3.bf16.msra.mxu1 %v6512_v59 }
 0x16b   :  { %5417 = vmatprep.subr.bf16.mxu0 %v6228_v10  ;;  %5449 = vmatprep.subr.bf16.mxu1 %v6515_v60 }
 0x16d   :  { %4646 = vmatmul.mubr.msk.f32.vlgmr.msra.gmra.mrb[24].mxu0 %vm7056_vm1, %v7759_v13  ;;  %3266 = vmatmul.mubr.msk.f32.vlgmr.msra.gmra.mrb[24].mxu1 %vm6708_vm10, %v7759_v13 }
 0x16e   :  { %3267 = vmatprep.mubr.msk.f32.mxu1 %vm6874_vm13, %v7759_v13  ;;  %5419 = vmatpush3.bf16.msra.mxu0 %v6242_v15 }
 0x16f   :  { %3269 = vmatprep.mubr.msk.f32.mxu0 %vm7009_vm0, %v7759_v13  ;;  %5451 = vmatpush3.bf16.msra.mxu1 %v6515_v60 }
 0x170   :  { %5421 = vmatprep.subr.bf16.mxu0 %v6257_v20  ;;  %5453 = vmatprep.subr.bf16.mxu1 %v6556_v22 }
 0x171   :  { %v3412_v24 = vpop.f32.mrb[2].mxu1  ;;  %3268 = vmatmul.mubr.msk.f32.gmra.mrb[26].mxu1 %vm6749_vm11, %v7759_v13 }
 0x172   :  { %v3413_v25 = vpop.f32.mrb[3].mxu1  ;;  %5423 = vmatpush3.bf16.msra.mxu0 %v6300_v35  ;;  %4680 = vmatprep.mubr.msk.f32.mxu1 %vm7077_vm2, %v7759_v13 }
 0x173   :  { %v3414_v31 = vadd.f32 %v3413_v25, %v3412_v24  ;;  %5455 = vmatpush3.bf16.msra.mxu1 %v6556_v22  ;;  %5425 = vmatprep.subr.bf16.mxu0 %v6307_v37  ;;  %v6163_v25 = vmov 14  }
 0x174   :  { %5457 = vmatprep.subr.bf16.mxu1 %v6576_v29  ;;  %6110 = vset.pattern.permute.xlu0 %v6163_v25 }
 0x175   :  { %v444_v0 = vadd.f32 %v3414_v31, %v3376_v54  ;;  %6111 = vset.pattern.permute.xlu1 %v6163_v25  ;;  %v7151_v31 = vld [vmem:[%s7753_s0] sm:$0xff] }
 0x176   :  { %5427 = vmatpush3.bf16.msra.mxu0 %v6349_v50  ;;  %194 = vperm.xlu0 %6110, %v7151_v31  }
 0x177   :  { %5459 = vmatpush3.bf16.msra.mxu1 %v6576_v29  ;;  %5429 = vmatprep.subr.bf16.mxu0 %v6352_v51 }
 0x178   :  { %5461 = vmatprep.subr.bf16.mxu1 %v6598_v41 }
 0x17a   :  { %5431 = vmatpush3.bf16.msra.mxu0 %v6387_v63  ;;  %6113 = vset.pattern.permute.xlu0 %v6164_v57 }
 0x17b   :  { %5463 = vmatpush3.bf16.msra.mxu1 %v6598_v41  ;;  %5433 = vmatprep.subr.bf16.mxu0 %v6390_v2 }
 0x17c   :  { %5465 = vmatprep.subr.bf16.mxu1 %v6617_v53  ;;  %v4507_v44 = vpop.f32.mrb[4].mxu0 }
 0x17d   :  { %v3465_v36 = vpop.f32.mrb[4].mxu1  ;;  %v7101_v39 = vadd.f32 %v4507_v44, %v444_v0  ;;  %v513_v9 = vpop.f32.mrb[5].mxu0  ;;  %v6123_v0 = vld [vmem:[%s7753_s0 + $0x8] sm:$0xff] }
 0x17e   :  { %v3466_v32 = vpop.f32.mrb[5].mxu1  ;;  %5435 = vmatpush3.bf16.msra.mxu0 %v6418_v16  ;;  %v7104_v45 = vadd.f32 %v513_v9, %v439_v34  ;;  %v138_v34 = vpop.permute.xlu0 %137  ;;  %197 = vperm.xlu1 %6111, %v6123_v0  }
 0x17f   :  { %v3467_v47 = vadd.f32 %v3466_v32, %v3465_v36  ;;  %5467 = vmatpush3.bf16.msra.mxu1 %v6617_v53  ;;  %5437 = vmatprep.subr.bf16.mxu0 %v6428_v18  ;;  %vm7120_vm3 = vcmp.eq.s32.totalorder %v138_v34, %v6530_v7 }
 0x180   :  { %5469 = vmatprep.subr.bf16.mxu1 %v6636_v62  ;;  %209 = vperm.xlu0 %6113, %v6123_v0  }
 0x181   :  { %v3468_v54 = vpop.f32.mrb[6].mxu1 }
 0x182   :  { %v3469_v4 = vpop.f32.mrb[7].mxu1  ;;  %5439 = vmatpush3.bf16.msra.mxu0 %v6455_v33  ;;  %6112 = vset.pattern.permute.xlu1 %v6164_v57 }
 0x183   :  { %v3470_v14 = vadd.f32 %v3469_v4, %v3468_v54  ;;  %5471 = vmatpush3.bf16.msra.mxu1 %v6636_v62  ;;  %5441 = vmatprep.subr.bf16.mxu0 %v6465_v40 }
 0x184   :  { %5473 = vmatprep.subr.bf16.mxu1 %v6654_v1  ;;  %206 = vperm.xlu1 %6112, %v7151_v31  }
 0x186   :  { %5443 = vmatpush3.bf16.msra.mxu0 %v6493_v49 }
 0x187   :  { %5475 = vmatpush3.bf16.msra.mxu1 %v6654_v1  ;;  %5445 = vmatprep.subr.bf16.mxu0 %v6502_v55 }
 0x188   :  { %5477 = vmatprep.subr.bf16.mxu1 %v6675_v27 }
 0x18a   :  { %5447 = vmatpush3.bf16.msra.mxu0 %v6518_v61 }
 0x18b   :  { %5479 = vmatpush3.bf16.msra.mxu1 %v6675_v27  ;;  %5481 = vmatprep.subr.bf16.mxu0 %v6217_v6 }
 0x18c   :  { %5513 = vmatprep.subr.bf16.mxu1 %v6228_v10 }
 0x18d   :  { %3270 = vmatmul.mubr.msk.f32.vlgmr.msra.gmra.mrb[26].mxu0 %vm6896_vm14, %v7759_v13 }
 0x18e   :  { %3271 = vmatprep.mubr.msk.f32.mxu0 %vm7056_vm1, %v7759_v13  ;;  %4681 = vmatmul.mubr.msk.f32.vlgmr.msra.gmra.mrb[28].mxu1 %vm7120_vm3, %v7759_v13 }
 0x18f   :  { %5483 = vmatpush3.bf16.msra.mxu0 %v6230_v11  ;;  %5515 = vmatpush3.bf16.msra.mxu1 %v6242_v15 }
 0x190   :  { %5485 = vmatprep.subr.bf16.mxu0 %v6255_v19  ;;  %5517 = vmatprep.subr.bf16.mxu1 %v6257_v20 }
 0x191   :  { %3272 = vmatmul.mubr.msk.f32.gmra.mrb[28].mxu0 %vm6936_vm15, %v7759_v13  ;;  %3279 = vmatprep.mubr.msk.f32.mxu1 %vm7077_vm2, %v7759_v13 }
 0x192   :  { %3275 = vmatprep.mubr.msk.f32.mxu0 %vm6896_vm14, %v7759_v13 }
 0x193   :  { %5487 = vmatpush3.bf16.msra.mxu0 %v6269_v26  ;;  %5519 = vmatpush3.bf16.msra.mxu1 %v6300_v35 }
 0x194   :  { %5489 = vmatprep.subr.bf16.mxu0 %v6282_v30  ;;  %5521 = vmatprep.subr.bf16.mxu1 %v6307_v37 }
 0x197   :  { %5491 = vmatpush3.bf16.msra.mxu0 %v6309_v38  ;;  %5523 = vmatpush3.bf16.msra.mxu1 %v6349_v50 }
 0x198   :  { %5493 = vmatprep.subr.bf16.mxu0 %v6324_v43  ;;  %5525 = vmatprep.subr.bf16.mxu1 %v6352_v51 }
 0x19b   :  { %5495 = vmatpush3.bf16.msra.mxu0 %v6354_v52  ;;  %5527 = vmatpush3.bf16.msra.mxu1 %v6387_v63 }
 0x19c   :  { %5497 = vmatprep.subr.bf16.mxu0 %v6362_v56  ;;  %5529 = vmatprep.subr.bf16.mxu1 %v6390_v2  ;;  %v3503_v44 = vpop.f32.mrb[6].mxu0 }
 0x19d   :  { %v3504_v36 = vpop.f32.mrb[7].mxu0  ;;  %v4542_v9 = vpop.f32.mrb[8].mxu1 }
 0x19e   :  { %v3505_v32 = vadd.f32 %v3504_v36, %v3503_v44  ;;  %v738_v54 = vpop.f32.mrb[9].mxu1 }
 0x19f   :  { %5499 = vmatpush3.bf16.msra.mxu0 %v6392_v3  ;;  %5531 = vmatpush3.bf16.msra.mxu1 %v6418_v16 }
 0x1a0   :  { %5501 = vmatprep.subr.bf16.mxu0 %v6400_v8  ;;  %5533 = vmatprep.subr.bf16.mxu1 %v6428_v18  ;;  %v3506_v4 = vpop.f32.mrb[8].mxu0  ;;  %v664_v34 = vadd.f32 %v3505_v32, %v3467_v47  ;;  %v7798_v47 = vmov 1.0  }
 0x1a1   :  { %v3507_v25 = vpop.f32.mrb[9].mxu0 }
 0x1a2   :  { %v3508_v13 = vadd.f32 %v3507_v25, %v3506_v4  ;;  %v7173_v21 = vadd.f32 %v738_v54, %v664_v34 }
 0x1a3   :  { %5503 = vmatpush3.bf16.msra.mxu0 %v6437_v23  ;;  %5535 = vmatpush3.bf16.msra.mxu1 %v6455_v33 }
 0x1a4   :  { %v669_v44 = vadd.f32 %v3508_v13, %v3470_v14  ;;  %5505 = vmatprep.subr.bf16.mxu0 %v6445_v28  ;;  %5537 = vmatprep.subr.bf16.mxu1 %v6465_v40  ;;  %v147_v14 = vpop.permute.xlu1 %146 }
 0x1a5   :  { %vm7208_vm4 = vcmp.eq.s32.totalorder %v147_v14, %v6530_v7 }
 0x1a6   :  { %v7181_v16 = vadd.f32 %v4542_v9, %v669_v44  ;;  %v7800_v17 = vsel %vm7208_vm4, 4294967295, %v7799_v17 }
 0x1a7   :  { %5507 = vmatpush3.bf16.msra.mxu0 %v6474_v42  ;;  %5539 = vmatpush3.bf16.msra.mxu1 %v6493_v49  ;;  %7801 = vst [vmem:[#allocation9_spill] sm:$0xff] %v7800_v17 }
 0x1a8   :  { %5509 = vmatprep.subr.bf16.mxu0 %v6484_v46  ;;  %5541 = vmatprep.subr.bf16.mxu1 %v6502_v55 }
 0x1ab   :  { %5511 = vmatpush3.bf16.msra.mxu0 %v6512_v59  ;;  %5543 = vmatpush3.bf16.msra.mxu1 %v6518_v61 }
 0x1ac   :  { %5545 = vmatprep.subr.bf16.mxu0 %v6515_v60  ;;  %5577 = vmatprep.subr.bf16.mxu1 %v6217_v6 }
 0x1ae   :  { %3276 = vmatmul.mubr.msk.f32.vlgmr.msra.gmra.mrb[30].mxu0 %vm6826_vm12, %v7798_v47  ;;  %3280 = vmatmul.mubr.msk.f32.vlgmr.msra.gmra.mrb[30].mxu1 %vm7009_vm0, %v7798_v47 }
 0x1af   :  { %3277 = vmatprep.mubr.msk.f32.mxu0 %vm6936_vm15, %v7798_v47  ;;  %3281 = vmatprep.mubr.msk.f32.mxu1 %vm7120_vm3, %v7798_v47 }
 0x1b0   :  { %5547 = vmatpush3.bf16.msra.mxu0 %v6515_v60  ;;  %5579 = vmatpush3.bf16.msra.mxu1 %v6230_v11 }
 0x1b1   :  { %5549 = vmatprep.subr.bf16.mxu0 %v6556_v22  ;;  %5581 = vmatprep.subr.bf16.mxu1 %v6255_v19 }
 0x1b2   :  { %3278 = vmatmul.mubr.msk.f32.gmra.mrb[32].mxu0 %vm6874_vm13, %v7798_v47  ;;  %3282 = vmatmul.mubr.msk.f32.gmra.mrb[32].mxu1 %vm7056_vm1, %v7798_v47 }
 0x1b3   :  { %3285 = vmatprep.mubr.msk.f32.mxu1 %vm7009_vm0, %v7798_v47  ;;  %4715 = vmatprep.mubr.msk.f32.mxu0 %vm7208_vm4, %v7798_v47 }
 0x1b4   :  { %5551 = vmatpush3.bf16.msra.mxu0 %v6556_v22  ;;  %5583 = vmatpush3.bf16.msra.mxu1 %v6269_v26 }
 0x1b5   :  { %5553 = vmatprep.subr.bf16.mxu0 %v6576_v29  ;;  %5585 = vmatprep.subr.bf16.mxu1 %v6282_v30 }
 0x1b8   :  { %5555 = vmatpush3.bf16.msra.mxu0 %v6576_v29  ;;  %5587 = vmatpush3.bf16.msra.mxu1 %v6309_v38 }
 0x1b9   :  { %5557 = vmatprep.subr.bf16.mxu0 %v6598_v41  ;;  %5589 = vmatprep.subr.bf16.mxu1 %v6324_v43 }
 0x1bc   :  { %5559 = vmatpush3.bf16.msra.mxu0 %v6598_v41  ;;  %5591 = vmatpush3.bf16.msra.mxu1 %v6354_v52 }
 0x1bd   :  { %5561 = vmatprep.subr.bf16.mxu0 %v6617_v53  ;;  %5593 = vmatprep.subr.bf16.mxu1 %v6362_v56  ;;  %v3559_v9 = vpop.f32.mrb[10].mxu0  ;;  %v3597_v32 = vpop.f32.mrb[10].mxu1 }
 0x1be   :  { %v3560_v31 = vpop.f32.mrb[11].mxu0  ;;  %v3598_v0 = vpop.f32.mrb[11].mxu1 }
 0x1bf   :  { %v3561_v54 = vadd.f32 %v3560_v31, %v3559_v9  ;;  %v3599_v4 = vadd.f32 %v3598_v0, %v3597_v32  ;;  %v150_v32 = vpop.permute.xlu1 %149 }
 0x1c0   :  { %5563 = vmatpush3.bf16.msra.mxu0 %v6617_v53  ;;  %5595 = vmatpush3.bf16.msra.mxu1 %v6392_v3  ;;  %vm7256_vm5 = vcmp.eq.s32.totalorder %v150_v32, %v6530_v7 }
 0x1c1   :  { %5565 = vmatprep.subr.bf16.mxu0 %v6636_v62  ;;  %5597 = vmatprep.subr.bf16.mxu1 %v6400_v8  ;;  %v3562_v34 = vpop.f32.mrb[12].mxu0  ;;  %v3600_v25 = vpop.f32.mrb[12].mxu1  ;;  %v891_v44 = vadd.f32 %v3599_v4, %v3561_v54 }
 0x1c2   :  { %v3563_v14 = vpop.f32.mrb[13].mxu0  ;;  %v3601_v57 = vpop.f32.mrb[13].mxu1 }
 0x1c3   :  { %v3564_v36 = vadd.f32 %v3563_v14, %v3562_v34  ;;  %v3602_v13 = vadd.f32 %v3601_v57, %v3600_v25  ;;  %v7806_v34 = vld [vmem:[#allocation6_spill] sm:$0xff]  ;;  %v7807_v57 = vmax.f32 %v7101_v39, %v7181_v16  ;;  %v162_v16 = vpop.permute.xlu1 %161 }
 0x1c4   :  { %5567 = vmatpush3.bf16.msra.mxu0 %v6636_v62  ;;  %5599 = vmatpush3.bf16.msra.mxu1 %v6437_v23  ;;  %vm7324_vm7 = vcmp.eq.s32.totalorder %v162_v16, %v6530_v7 }
 0x1c5   :  { %5569 = vmatprep.subr.bf16.mxu0 %v6654_v1  ;;  %5601 = vmatprep.subr.bf16.mxu1 %v6445_v28  ;;  %v896_v9 = vadd.f32 %v3602_v13, %v3564_v36  ;;  %v159_v13 = vpop.permute.xlu0 %158 }
 0x1c6   :  { %vm7275_vm6 = vcmp.eq.s32.totalorder %v159_v13, %v6530_v7  ;;  %v7808_v13 = vmax.f32 %v7104_v45, %v7173_v21 }
 0x1c8   :  { %5571 = vmatpush3.bf16.msra.mxu0 %v6654_v1  ;;  %5603 = vmatpush3.bf16.msra.mxu1 %v6474_v42 }
 0x1c9   :  { %5573 = vmatprep.subr.bf16.mxu0 %v6675_v27  ;;  %5605 = vmatprep.subr.bf16.mxu1 %v6484_v46 }
 0x1cc   :  { %5575 = vmatpush3.bf16.msra.mxu0 %v6675_v27  ;;  %5607 = vmatpush3.bf16.msra.mxu1 %v6512_v59 }
 0x1cd   :  { %5609 = vmatprep.subr.bf16.mxu0 %v6228_v10  ;;  %5641 = vmatprep.subr.bf16.mxu1 %v6515_v60 }
 0x1cf   :  { %4716 = vmatmul.mubr.msk.f32.vlgmr.msra.gmra.mrb[34].mxu0 %vm7256_vm5, %v7798_v47  ;;  %3286 = vmatmul.mubr.msk.f32.vlgmr.msra.gmra.mrb[34].mxu1 %vm6896_vm14, %v7798_v47 }
 0x1d0   :  { %3287 = vmatprep.mubr.msk.f32.mxu1 %vm7056_vm1, %v7798_v47  ;;  %5611 = vmatpush3.bf16.msra.mxu0 %v6242_v15 }
 0x1d1   :  { %3289 = vmatprep.mubr.msk.f32.mxu0 %vm7208_vm4, %v7798_v47  ;;  %5643 = vmatpush3.bf16.msra.mxu1 %v6515_v60 }
 0x1d2   :  { %5613 = vmatprep.subr.bf16.mxu0 %v6257_v20  ;;  %5645 = vmatprep.subr.bf16.mxu1 %v6556_v22 }
 0x1d3   :  { %3288 = vmatmul.mubr.msk.f32.gmra.mrb[36].mxu1 %vm6936_vm15, %v7798_v47 }
 0x1d4   :  { %5615 = vmatpush3.bf16.msra.mxu0 %v6300_v35  ;;  %4750 = vmatprep.mubr.msk.f32.mxu1 %vm7275_vm6, %v7798_v47 }
 0x1d5   :  { %5647 = vmatpush3.bf16.msra.mxu1 %v6556_v22  ;;  %5617 = vmatprep.subr.bf16.mxu0 %v6307_v37 }
 0x1d6   :  { %5649 = vmatprep.subr.bf16.mxu1 %v6576_v29 }
 0x1d8   :  { %5619 = vmatpush3.bf16.msra.mxu0 %v6349_v50 }
 0x1d9   :  { %5651 = vmatpush3.bf16.msra.mxu1 %v6576_v29  ;;  %5621 = vmatprep.subr.bf16.mxu0 %v6352_v51 }
 0x1da   :  { %5653 = vmatprep.subr.bf16.mxu1 %v6598_v41 }
 0x1dc   :  { %5623 = vmatpush3.bf16.msra.mxu0 %v6387_v63 }
 0x1dd   :  { %5655 = vmatpush3.bf16.msra.mxu1 %v6598_v41  ;;  %5625 = vmatprep.subr.bf16.mxu0 %v6390_v2 }
 0x1de   :  { %5657 = vmatprep.subr.bf16.mxu1 %v6617_v53  ;;  %v4577_v5 = vpop.f32.mrb[14].mxu0  ;;  %v3653_v58 = vpop.f32.mrb[14].mxu1 }
 0x1df   :  { %v971_v0 = vadd.f32 %v4577_v5, %v896_v9  ;;  %v965_v54 = vpop.f32.mrb[15].mxu0  ;;  %v3654_v4 = vpop.f32.mrb[15].mxu1 }
 0x1e0   :  { %5627 = vmatpush3.bf16.msra.mxu0 %v7806_v34  ;;  %v966_v25 = vadd.f32 %v965_v54, %v891_v44  ;;  %v3655_v14 = vadd.f32 %v3654_v4, %v3653_v58 }
 0x1e1   :  { %5659 = vmatpush3.bf16.msra.mxu1 %v6617_v53  ;;  %v7304_v32 = vmax.f32 %v7807_v57, %v971_v0  ;;  %5629 = vmatprep.subr.bf16.mxu0 %v6428_v18 }
 0x1e2   :  { %v7310_v41 = vmax.f32 %v7808_v13, %v966_v25  ;;  %5661 = vmatprep.subr.bf16.mxu1 %v6636_v62  ;;  %v3656_v9 = vpop.f32.mrb[16].mxu1 }
 0x1e3   :  { %v3657_v5 = vpop.f32.mrb[17].mxu1 }
 0x1e4   :  { %5631 = vmatpush3.bf16.msra.mxu0 %v6455_v33  ;;  %v3658_v44 = vadd.f32 %v3657_v5, %v3656_v9 }
 0x1e5   :  { %5663 = vmatpush3.bf16.msra.mxu1 %v6636_v62  ;;  %5633 = vmatprep.subr.bf16.mxu0 %v6465_v40 }
 0x1e6   :  { %5665 = vmatprep.subr.bf16.mxu1 %v6654_v1 }
 0x1e8   :  { %5635 = vmatpush3.bf16.msra.mxu0 %v6493_v49 }
 0x1e9   :  { %5667 = vmatpush3.bf16.msra.mxu1 %v6654_v1  ;;  %5637 = vmatprep.subr.bf16.mxu0 %v6502_v55 }
 0x1ea   :  { %5669 = vmatprep.subr.bf16.mxu1 %v6675_v27 }
 0x1ec   :  { %5639 = vmatpush3.bf16.msra.mxu0 %v6518_v61 }
 0x1ed   :  { %5671 = vmatpush3.bf16.msra.mxu1 %v6675_v27  ;;  %5673 = vmatprep.subr.bf16.mxu0 %v6217_v6 }
 0x1ee   :  { %5705 = vmatprep.subr.bf16.mxu1 %v6228_v10 }
 0x1ef   :  { %3290 = vmatmul.mubr.msk.f32.vlgmr.msra.gmra.mrb[36].mxu0 %vm7077_vm2, %v7798_v47 }
 0x1f0   :  { %3291 = vmatprep.mubr.msk.f32.mxu0 %vm7256_vm5, %v7798_v47  ;;  %4751 = vmatmul.mubr.msk.f32.vlgmr.msra.gmra.mrb[38].mxu1 %vm7324_vm7, %v7798_v47 }
 0x1f1   :  { %5675 = vmatpush3.bf16.msra.mxu0 %v6230_v11  ;;  %5707 = vmatpush3.bf16.msra.mxu1 %v6242_v15 }
 0x1f2   :  { %5677 = vmatprep.subr.bf16.mxu0 %v6255_v19  ;;  %5709 = vmatprep.subr.bf16.mxu1 %v6257_v20 }
 0x1f3   :  { %3292 = vmatmul.mubr.msk.f32.gmra.mrb[38].mxu0 %vm7120_vm3, %v7798_v47  ;;  %3299 = vmatprep.mubr.msk.f32.mxu1 %vm7275_vm6, %v7798_v47 }
 0x1f4   :  { %3295 = vmatprep.mubr.msk.f32.mxu0 %vm7077_vm2, %v7798_v47 }
 0x1f5   :  { %5679 = vmatpush3.bf16.msra.mxu0 %v6269_v26  ;;  %5711 = vmatpush3.bf16.msra.mxu1 %v6300_v35 }
 0x1f6   :  { %5681 = vmatprep.subr.bf16.mxu0 %v6282_v30  ;;  %5713 = vmatprep.subr.bf16.mxu1 %v6307_v37 }
 0x1f9   :  { %5683 = vmatpush3.bf16.msra.mxu0 %v6309_v38  ;;  %5715 = vmatpush3.bf16.msra.mxu1 %v6349_v50 }
 0x1fa   :  { %5685 = vmatprep.subr.bf16.mxu0 %v6324_v43  ;;  %5717 = vmatprep.subr.bf16.mxu1 %v6352_v51 }
 0x1fd   :  { %5687 = vmatpush3.bf16.msra.mxu0 %v6354_v52  ;;  %5719 = vmatpush3.bf16.msra.mxu1 %v6387_v63 }
 0x1fe   :  { %5689 = vmatprep.subr.bf16.mxu0 %v6362_v56  ;;  %5721 = vmatprep.subr.bf16.mxu1 %v6390_v2  ;;  %v3691_v45 = vpop.f32.mrb[16].mxu0 }
 0x1ff   :  { %v3692_v58 = vpop.f32.mrb[17].mxu0  ;;  %v4612_v0 = vpop.f32.mrb[18].mxu1 }
 0x200   :  { %v3693_v54 = vadd.f32 %v3692_v58, %v3691_v45  ;;  %v1192_v4 = vpop.f32.mrb[19].mxu1 }
 0x201   :  { %5691 = vmatpush3.bf16.msra.mxu0 %v6392_v3  ;;  %5723 = vmatpush3.bf16.msra.mxu1 %v7806_v34 }
 0x202   :  { %5693 = vmatprep.subr.bf16.mxu0 %v6400_v8  ;;  %5725 = vmatprep.subr.bf16.mxu1 %v6428_v18  ;;  %v3694_v25 = vpop.f32.mrb[18].mxu0  ;;  %v1118_v57 = vadd.f32 %v3693_v54, %v3655_v14 }
 0x203   :  { %v3695_v13 = vpop.f32.mrb[19].mxu0 }
 0x204   :  { %v7368_v9 = vadd.f32 %v1192_v4, %v1118_v57  ;;  %v3696_v5 = vadd.f32 %v3695_v13, %v3694_v25 }
 0x205   :  { %5695 = vmatpush3.bf16.msra.mxu0 %v6437_v23  ;;  %5727 = vmatpush3.bf16.msra.mxu1 %v6455_v33 }
 0x206   :  { %v1123_v45 = vadd.f32 %v3696_v5, %v3658_v44  ;;  %5697 = vmatprep.subr.bf16.mxu0 %v6445_v28  ;;  %5729 = vmatprep.subr.bf16.mxu1 %v6465_v40  ;;  %v7388_v44 = vpop.permute.xlu1 %170 }
 0x207   :  { %vm175_vm8 = vcmp.eq.s32.totalorder %v7388_v44, %v6530_v7 }
 0x208   :  { %v7376_v58 = vadd.f32 %v4612_v0, %v1123_v45 }
 0x209   :  { %5699 = vmatpush3.bf16.msra.mxu0 %v6474_v42  ;;  %5731 = vmatpush3.bf16.msra.mxu1 %v6493_v49 }
 0x20a   :  { %5701 = vmatprep.subr.bf16.mxu0 %v6484_v46  ;;  %5733 = vmatprep.subr.bf16.mxu1 %v6502_v55 }
 0x20d   :  { %5703 = vmatpush3.bf16.msra.mxu0 %v6512_v59  ;;  %5735 = vmatpush3.bf16.msra.mxu1 %v6518_v61 }
 0x20e   :  { %5737 = vmatprep.subr.bf16.mxu0 %v6515_v60  ;;  %5769 = vmatprep.subr.bf16.mxu1 %v6217_v6 }
 0x210   :  { %3296 = vmatmul.mubr.msk.f32.vlgmr.msra.gmra.mrb[40].mxu0 %vm7009_vm0, %v7798_v47  ;;  %3300 = vmatmul.mubr.msk.f32.vlgmr.msra.gmra.mrb[40].mxu1 %vm7208_vm4, %v7798_v47  ;;  %vm3041_vm0 = vcmask 261120  }
 0x211   :  { %3297 = vmatprep.mubr.msk.f32.mxu0 %vm7120_vm3, %v7798_v47  ;;  %3301 = vmatprep.mubr.msk.f32.mxu1 %vm7324_vm7, %v7798_v47 }
 0x212   :  { %5739 = vmatpush3.bf16.msra.mxu0 %v6515_v60  ;;  %5771 = vmatpush3.bf16.msra.mxu1 %v6230_v11 }
 0x213   :  { %5741 = vmatprep.subr.bf16.mxu0 %v6556_v22  ;;  %5773 = vmatprep.subr.bf16.mxu1 %v6255_v19 }
 0x214   :  { %3298 = vmatmul.mubr.msk.f32.gmra.mrb[42].mxu0 %vm7056_vm1, %v7798_v47  ;;  %3302 = vmatmul.mubr.msk.f32.gmra.mrb[42].mxu1 %vm7256_vm5, %v7798_v47 }
 0x215   :  { %3305 = vmatprep.mubr.msk.f32.mxu1 %vm7208_vm4, %v7798_v47  ;;  %4785 = vmatprep.mubr.msk.f32.mxu0 %vm175_vm8, %v7798_v47 }
 0x216   :  { %5743 = vmatpush3.bf16.msra.mxu0 %v6556_v22  ;;  %5775 = vmatpush3.bf16.msra.mxu1 %v6269_v26 }
 0x217   :  { %5745 = vmatprep.subr.bf16.mxu0 %v6576_v29  ;;  %5777 = vmatprep.subr.bf16.mxu1 %v6282_v30 }
 0x21a   :  { %5747 = vmatpush3.bf16.msra.mxu0 %v6576_v29  ;;  %5779 = vmatpush3.bf16.msra.mxu1 %v6309_v38 }
 0x21b   :  { %5749 = vmatprep.subr.bf16.mxu0 %v7812_v48  ;;  %5781 = vmatprep.subr.bf16.mxu1 %v6324_v43 }
 0x21e   :  { %5751 = vmatpush3.bf16.msra.mxu0 %v7812_v48  ;;  %5783 = vmatpush3.bf16.msra.mxu1 %v6354_v52 }
 0x21f   :  { %5753 = vmatprep.subr.bf16.mxu0 %v6617_v53  ;;  %5785 = vmatprep.subr.bf16.mxu1 %v6362_v56  ;;  %v3747_v12 = vpop.f32.mrb[20].mxu0  ;;  %v3785_v0 = vpop.f32.mrb[20].mxu1 }
 0x220   :  { %v3748_v54 = vpop.f32.mrb[21].mxu0  ;;  %v3786_v4 = vpop.f32.mrb[21].mxu1 }
 0x221   :  { %v3749_v25 = vadd.f32 %v3748_v54, %v3747_v12  ;;  %v3787_v57 = vadd.f32 %v3786_v4, %v3785_v0  ;;  %v7445_v0 = vpop.permute.xlu0 %173 }
 0x222   :  { %5755 = vmatpush3.bf16.msra.mxu0 %v6617_v53  ;;  %5787 = vmatpush3.bf16.msra.mxu1 %v6392_v3  ;;  %vm176_vm9 = vcmp.eq.s32.totalorder %v7445_v0, %v6530_v7 }
 0x223   :  { %5757 = vmatprep.subr.bf16.mxu0 %v6636_v62  ;;  %5789 = vmatprep.subr.bf16.mxu1 %v6400_v8  ;;  %v3750_v13 = vpop.f32.mrb[22].mxu0  ;;  %v3788_v5 = vpop.f32.mrb[22].mxu1  ;;  %v1345_v45 = vadd.f32 %v3787_v57, %v3749_v25  ;;  %v7813_v25 = vmax.f32 %v7304_v32, %v7376_v58  ;;  %v7815_v32 = vld [vmem:[#allocation5_spill] sm:$0xff] }
 0x224   :  { %v3751_v16 = vpop.f32.mrb[23].mxu0  ;;  %v3789_v14 = vpop.f32.mrb[23].mxu1 }
 0x225   :  { %v3752_v17 = vadd.f32 %v3751_v16, %v3750_v13  ;;  %v3790_v56 = vadd.f32 %v3789_v14, %v3788_v5  ;;  %v7814_v13 = vmax.f32 %v7310_v41, %v7368_v9 }
 0x226   :  { %5759 = vmatpush3.bf16.msra.mxu0 %v6636_v62  ;;  %5791 = vmatpush3.bf16.msra.mxu1 %v6437_v23 }
 0x227   :  { %5761 = vmatprep.subr.bf16.mxu0 %v6654_v1  ;;  %5793 = vmatprep.subr.bf16.mxu1 %v6445_v28  ;;  %v1350_v12 = vadd.f32 %v3790_v56, %v3752_v17  ;;  %v7464_v56 = vpop.permute.xlu1 %182 }
 0x228   :  { %vm187_vm10 = vcmp.eq.s32.totalorder %v7464_v56, %v6530_v7 }
 0x22a   :  { %5763 = vmatpush3.bf16.msra.mxu0 %v6654_v1  ;;  %5795 = vmatpush3.bf16.msra.mxu1 %v6474_v42 }
 0x22b   :  { %5765 = vmatprep.subr.bf16.mxu0 %v6675_v27  ;;  %5797 = vmatprep.subr.bf16.mxu1 %v6484_v46  ;;  %v7516_v41 = vpop.permute.xlu1 %185 }
 0x22c   :  { %vm188_vm11 = vcmp.eq.s32.totalorder %v7516_v41, %v6530_v7 }
 0x22e   :  { %5767 = vmatpush3.bf16.msra.mxu0 %v6675_v27  ;;  %5799 = vmatpush3.bf16.msra.mxu1 %v6512_v59 }
 0x22f   :  { %5801 = vmatprep.subr.bf16.mxu0 %v6228_v10  ;;  %5833 = vmatprep.subr.bf16.mxu1 %v6515_v60 }
 0x231   :  { %4786 = vmatmul.mubr.msk.f32.vlgmr.msra.gmra.mrb[44].mxu0 %vm176_vm9, %v7798_v47  ;;  %3306 = vmatmul.mubr.msk.f32.vlgmr.msra.gmra.mrb[44].mxu1 %vm7077_vm2, %v7798_v47 }
 0x232   :  { %3307 = vmatprep.mubr.msk.f32.mxu1 %vm7256_vm5, %v7798_v47  ;;  %5803 = vmatpush3.bf16.msra.mxu0 %v6242_v15 }
 0x233   :  { %3309 = vmatprep.mubr.msk.f32.mxu0 %vm175_vm8, %v7798_v47  ;;  %5835 = vmatpush3.bf16.msra.mxu1 %v6515_v60 }
 0x234   :  { %5805 = vmatprep.subr.bf16.mxu0 %v6257_v20  ;;  %5837 = vmatprep.subr.bf16.mxu1 %v6556_v22 }
 0x235   :  { %3308 = vmatmul.mubr.msk.f32.gmra.mrb[46].mxu1 %vm7120_vm3, %v7798_v47 }
 0x236   :  { %5807 = vmatpush3.bf16.msra.mxu0 %v6300_v35  ;;  %4820 = vmatprep.mubr.msk.f32.mxu1 %vm187_vm10, %v7798_v47 }
 0x237   :  { %5839 = vmatpush3.bf16.msra.mxu1 %v6556_v22  ;;  %5809 = vmatprep.subr.bf16.mxu0 %v6307_v37 }
 0x238   :  { %5841 = vmatprep.subr.bf16.mxu1 %v6576_v29 }
 0x23a   :  { %5811 = vmatpush3.bf16.msra.mxu0 %v6349_v50 }
 0x23b   :  { %5843 = vmatpush3.bf16.msra.mxu1 %v6576_v29  ;;  %5813 = vmatprep.subr.bf16.mxu0 %v6352_v51 }
 0x23c   :  { %5845 = vmatprep.subr.bf16.mxu1 %v7812_v48 }
 0x23e   :  { %5815 = vmatpush3.bf16.msra.mxu0 %v6387_v63 }
 0x23f   :  { %5847 = vmatpush3.bf16.msra.mxu1 %v7812_v48  ;;  %5817 = vmatprep.subr.bf16.mxu0 %v6390_v2 }
 0x240   :  { %5849 = vmatprep.subr.bf16.mxu1 %v6617_v53  ;;  %v4647_v24 = vpop.f32.mrb[24].mxu0  ;;  %v3841_v17 = vpop.f32.mrb[24].mxu1 }
 0x241   :  { %v1425_v39 = vadd.f32 %v4647_v24, %v1350_v12  ;;  %v1419_v16 = vpop.f32.mrb[25].mxu0  ;;  %v3842_v14 = vpop.f32.mrb[25].mxu1 }
 0x242   :  { %5819 = vmatpush3.bf16.msra.mxu0 %v7806_v34  ;;  %v1420_v54 = vadd.f32 %v1419_v16, %v1345_v45  ;;  %v3843_v4 = vadd.f32 %v3842_v14, %v3841_v17 }
 0x243   :  { %5851 = vmatpush3.bf16.msra.mxu1 %v6617_v53  ;;  %v7499_v57 = vmax.f32 %v7813_v25, %v1425_v39  ;;  %5821 = vmatprep.subr.bf16.mxu0 %v6428_v18 }
 0x244   :  { %v7505_v5 = vmax.f32 %v7814_v13, %v1420_v54  ;;  %5853 = vmatprep.subr.bf16.mxu1 %v6636_v62  ;;  %v3844_v12 = vpop.f32.mrb[26].mxu1 }
 0x245   :  { %v3845_v24 = vpop.f32.mrb[27].mxu1 }
 0x246   :  { %5823 = vmatpush3.bf16.msra.mxu0 %v6455_v33  ;;  %v3846_v45 = vadd.f32 %v3845_v24, %v3844_v12 }
 0x247   :  { %5855 = vmatpush3.bf16.msra.mxu1 %v6636_v62  ;;  %5825 = vmatprep.subr.bf16.mxu0 %v6465_v40 }
 0x248   :  { %5857 = vmatprep.subr.bf16.mxu1 %v6654_v1 }
 0x24a   :  { %5827 = vmatpush3.bf16.msra.mxu0 %v6493_v49 }
 0x24b   :  { %5859 = vmatpush3.bf16.msra.mxu1 %v6654_v1  ;;  %5829 = vmatprep.subr.bf16.mxu0 %v6502_v55 }
 0x24c   :  { %5861 = vmatprep.subr.bf16.mxu1 %v6675_v27 }
 0x24e   :  { %5831 = vmatpush3.bf16.msra.mxu0 %v6518_v61 }
 0x24f   :  { %5863 = vmatpush3.bf16.msra.mxu1 %v6675_v27  ;;  %5865 = vmatprep.subr.bf16.mxu0 %v6217_v6 }
 0x250   :  { %5897 = vmatprep.subr.bf16.mxu1 %v6228_v10 }
 0x251   :  { %3310 = vmatmul.mubr.msk.f32.vlgmr.msra.gmra.mrb[46].mxu0 %vm7275_vm6, %v7798_v47 }
 0x252   :  { %3311 = vmatprep.mubr.msk.f32.mxu0 %vm176_vm9, %v7798_v47  ;;  %4821 = vmatmul.mubr.msk.f32.vlgmr.msra.gmra.mrb[48].mxu1 %vm188_vm11, %v7798_v47 }
 0x253   :  { %5867 = vmatpush3.bf16.msra.mxu0 %v6230_v11  ;;  %5899 = vmatpush3.bf16.msra.mxu1 %v6242_v15 }
 0x254   :  { %5869 = vmatprep.subr.bf16.mxu0 %v6255_v19  ;;  %5901 = vmatprep.subr.bf16.mxu1 %v6257_v20 }
 0x255   :  { %3312 = vmatmul.mubr.msk.f32.gmra.mrb[48].mxu0 %vm7324_vm7, %v7798_v47  ;;  %3319 = vmatprep.mubr.msk.f32.mxu1 %vm187_vm10, %v7798_v47 }
 0x256   :  { %3315 = vmatprep.mubr.msk.f32.mxu0 %vm7275_vm6, %v7798_v47 }
 0x257   :  { %5871 = vmatpush3.bf16.msra.mxu0 %v6269_v26  ;;  %5903 = vmatpush3.bf16.msra.mxu1 %v6300_v35 }
 0x258   :  { %5873 = vmatprep.subr.bf16.mxu0 %v6282_v30  ;;  %5905 = vmatprep.subr.bf16.mxu1 %v6307_v37 }
 0x25b   :  { %5875 = vmatpush3.bf16.msra.mxu0 %v6309_v38  ;;  %5907 = vmatpush3.bf16.msra.mxu1 %v6349_v50 }
 0x25c   :  { %5877 = vmatprep.subr.bf16.mxu0 %v6324_v43  ;;  %5909 = vmatprep.subr.bf16.mxu1 %v6352_v51 }
 0x25f   :  { %5879 = vmatpush3.bf16.msra.mxu0 %v6354_v52  ;;  %5911 = vmatpush3.bf16.msra.mxu1 %v6387_v63 }
 0x260   :  { %5881 = vmatprep.subr.bf16.mxu0 %v7815_v32  ;;  %5913 = vmatprep.subr.bf16.mxu1 %v6390_v2  ;;  %v3879_v9 = vpop.f32.mrb[26].mxu0 }
 0x261   :  { %v3880_v58 = vpop.f32.mrb[27].mxu0  ;;  %v4682_v17 = vpop.f32.mrb[28].mxu1 }
 0x262   :  { %v3881_v39 = vadd.f32 %v3880_v58, %v3879_v9  ;;  %v1646_v16 = vpop.f32.mrb[29].mxu1 }
 0x263   :  { %5883 = vmatpush3.bf16.msra.mxu0 %v6392_v3  ;;  %5915 = vmatpush3.bf16.msra.mxu1 %v7806_v34 }
 0x264   :  { %5885 = vmatprep.subr.bf16.mxu0 %v6400_v8  ;;  %5917 = vmatprep.subr.bf16.mxu1 %v6428_v18  ;;  %v3882_v14 = vpop.f32.mrb[28].mxu0  ;;  %v1572_v54 = vadd.f32 %v3881_v39, %v3843_v4 }
 0x265   :  { %v3883_v25 = vpop.f32.mrb[29].mxu0 }
 0x266   :  { %v3884_v13 = vadd.f32 %v3883_v25, %v3882_v14  ;;  %v7565_v12 = vadd.f32 %v1646_v16, %v1572_v54 }
 0x267   :  { %5887 = vmatpush3.bf16.msra.mxu0 %v6437_v23  ;;  %5919 = vmatpush3.bf16.msra.mxu1 %v6455_v33 }
 0x268   :  { %v1577_v24 = vadd.f32 %v3884_v13, %v3846_v45  ;;  %v1655_v9 = vmax.f32 %v7505_v5, %v7565_v12  ;;  %5889 = vmatprep.subr.bf16.mxu0 %v6445_v28  ;;  %5921 = vmatprep.subr.bf16.mxu1 %v6465_v40  ;;  %v7585_v45 = vpop.permute.xlu0 %194 }
 0x269   :  { %vm199_vm12 = vcmp.eq.s32.totalorder %v7585_v45, %v6530_v7 }
 0x26a   :  { %v7573_v58 = vadd.f32 %v4682_v17, %v1577_v24 }
 0x26b   :  { %5891 = vmatpush3.bf16.msra.mxu0 %v6474_v42  ;;  %5923 = vmatpush3.bf16.msra.mxu1 %v6493_v49 }
 0x26c   :  { %5893 = vmatprep.subr.bf16.mxu0 %v6484_v46  ;;  %5925 = vmatprep.subr.bf16.mxu1 %v6502_v55  ;;  %v1656_v4 = vmax.f32 %v7499_v57, %v7573_v58 }
 0x26f   :  { %5895 = vmatpush3.bf16.msra.mxu0 %v6512_v59  ;;  %5927 = vmatpush3.bf16.msra.mxu1 %v6518_v61 }
 0x270   :  { %5929 = vmatprep.subr.bf16.mxu0 %v6515_v60  ;;  %5961 = vmatprep.subr.bf16.mxu1 %v6217_v6 }
 0x272   :  { %3316 = vmatmul.mubr.msk.f32.vlgmr.msra.gmra.mrb[50].mxu0 %vm7208_vm4, %v7798_v47  ;;  %3320 = vmatmul.mubr.msk.f32.vlgmr.msra.gmra.mrb[50].mxu1 %vm175_vm8, %v7798_v47 }
 0x273   :  { %3317 = vmatprep.mubr.msk.f32.mxu0 %vm7324_vm7, %v7798_v47  ;;  %3321 = vmatprep.mubr.msk.f32.mxu1 %vm188_vm11, %v7798_v47 }
 0x274   :  { %5931 = vmatpush3.bf16.msra.mxu0 %v6515_v60  ;;  %5963 = vmatpush3.bf16.msra.mxu1 %v6230_v11 }
 0x275   :  { %5933 = vmatprep.subr.bf16.mxu0 %v6556_v22  ;;  %5965 = vmatprep.subr.bf16.mxu1 %v6255_v19 }
 0x276   :  { %3318 = vmatmul.mubr.msk.f32.gmra.mrb[52].mxu0 %vm7256_vm5, %v7798_v47  ;;  %3322 = vmatmul.mubr.msk.f32.gmra.mrb[52].mxu1 %vm176_vm9, %v7798_v47 }
 0x277   :  { %3325 = vmatprep.mubr.msk.f32.mxu1 %vm175_vm8, %v7798_v47  ;;  %4855 = vmatprep.mubr.msk.f32.mxu0 %vm199_vm12, %v7798_v47 }
 0x278   :  { %5935 = vmatpush3.bf16.msra.mxu0 %v6556_v22  ;;  %5967 = vmatpush3.bf16.msra.mxu1 %v6269_v26 }
 0x279   :  { %5937 = vmatprep.subr.bf16.mxu0 %v6576_v29  ;;  %5969 = vmatprep.subr.bf16.mxu1 %v6282_v30 }
 0x27c   :  { %5939 = vmatpush3.bf16.msra.mxu0 %v6576_v29  ;;  %5971 = vmatpush3.bf16.msra.mxu1 %v6309_v38 }
 0x27d   :  { %5941 = vmatprep.subr.bf16.mxu0 %v7812_v48  ;;  %5973 = vmatprep.subr.bf16.mxu1 %v6324_v43 }
 0x280   :  { %5943 = vmatpush3.bf16.msra.mxu0 %v7812_v48  ;;  %5975 = vmatpush3.bf16.msra.mxu1 %v6354_v52 }
 0x281   :  { %5945 = vmatprep.subr.bf16.mxu0 %v6617_v53  ;;  %5977 = vmatprep.subr.bf16.mxu1 %v7815_v32  ;;  %v3935_v6 = vpop.f32.mrb[30].mxu0  ;;  %v3973_v11 = vpop.f32.mrb[30].mxu1 }
 0x282   :  { %v3936_v19 = vpop.f32.mrb[31].mxu0  ;;  %v3974_v26 = vpop.f32.mrb[31].mxu1 }
 0x283   :  { %v3937_v30 = vadd.f32 %v3936_v19, %v3935_v6  ;;  %v3975_v36 = vadd.f32 %v3974_v26, %v3973_v11 }
 0x284   :  { %5947 = vmatpush3.bf16.msra.mxu0 %v6617_v53  ;;  %5979 = vmatpush3.bf16.msra.mxu1 %v6392_v3 }
 0x285   :  { %5949 = vmatprep.subr.bf16.mxu0 %v6636_v62  ;;  %5981 = vmatprep.subr.bf16.mxu1 %v6400_v8  ;;  %v3938_v38 = vpop.f32.mrb[32].mxu0  ;;  %v3976_v43 = vpop.f32.mrb[32].mxu1  ;;  %v1799_v52 = vadd.f32 %v3975_v36, %v3937_v30  ;;  %v3030_v36 = vld [vmem:[%s7756_s3] sm:$0xff] }
 0x286   :  { %v3939_v44 = vpop.f32.mrb[33].mxu0  ;;  %v3977_v39 = vpop.f32.mrb[33].mxu1 }
 0x287   :  { %v3940_v32 = vadd.f32 %v3939_v44, %v3938_v38  ;;  %v3978_v16 = vadd.f32 %v3977_v39, %v3976_v43  ;;  %v198_v8 = vpop.permute.xlu1 %197  ;;  %v3031_v38 = vld [vmem:[%s7756_s3 + $0x8] sm:$0xff]  ;;  %v3033_v44 = vld [vmem:[%s7756_s3 + $0x18] sm:$0xff] }
 0x288   :  { %5951 = vmatpush3.bf16.msra.mxu0 %v6636_v62  ;;  %5983 = vmatpush3.bf16.msra.mxu1 %v6437_v23  ;;  %vm200_vm13 = vcmp.eq.s32.totalorder %v198_v8, %v6530_v7  ;;  %v6056_v43 = vpack.c.bf16 %v3031_v38, %v3030_v36  ;;  %v3336_v38 = vld [vmem:[%s7757_s4] ss:$0 sm:$0xff]  ;;  %s6167_s4 = smov [#allocation2]  }
 0x289   :  { %5953 = vmatprep.subr.bf16.mxu0 %v6654_v1  ;;  %5985 = vmatprep.subr.bf16.mxu1 %v6445_v28  ;;  %v1804_v3 = vadd.f32 %v3978_v16, %v3940_v32  ;;  %s3172_s21 = sshll.u32 %s6167_s4, 4  ;;  %s3173_s21 = int_to_ptr.vmem [resolvable:$true] %s3172_s21 }
 0x28a   :  { %s6124_s22 = scalar_lea.vmem %s3173_s21, 256  ;;  %p6129_p1 = scmp.lt.s32.totalorder %s3173_s21, %s3173_s21 }
 0x28b   :  { %v207_v23 = vpop.permute.xlu1 %206  ;;  %p6125_p0 = scmp.ne.s32.totalorder %s3173_s21, %s6124_s22  ;;  %p6130_p2 = scmp.lt.s32.totalorder %s6124_s22, %s6124_s22 }
 0x28c   :  { %5955 = vmatpush3.bf16.msra.mxu0 %v6654_v1  ;;  %5987 = vmatpush3.bf16.msra.mxu1 %v6474_v42  ;;  %vm211_vm14 = vcmp.eq.s32.totalorder %v207_v23, %v6530_v7 }
 0x28d   :  { %5957 = vmatprep.subr.bf16.mxu0 %v6675_v27  ;;  %5989 = vmatprep.subr.bf16.mxu1 %v6484_v46  ;;  %p6131_p3 = por %p6130_p2, %p6129_p1 }
 0x28f   :  { %p6132_p4 = pnand %p6131_p3, %p6125_p0 }
 0x290   :  { %5959 = vmatpush3.bf16.msra.mxu0 %v6675_v27  ;;  %5991 = vmatpush3.bf16.msra.mxu1 %v6512_v59 }
 0x291   :  { %5993 = vmatprep.subr.bf16.mxu0 %v6228_v10  ;;  %6025 = vmatprep.subr.bf16.mxu1 %v6515_v60 }
 0x293   :  { %4856 = vmatmul.mubr.msk.f32.vlgmr.msra.gmra.mrb[54].mxu0 %vm200_vm13, %v7798_v47  ;;  %3326 = vmatmul.mubr.msk.f32.vlgmr.msra.gmra.mrb[54].mxu1 %vm7275_vm6, %v7798_v47 }
 0x294   :  { %3327 = vmatprep.mubr.msk.f32.mxu1 %vm176_vm9, %v7798_v47  ;;  %5995 = vmatpush3.bf16.msra.mxu0 %v6242_v15 }
 0x295   :  { %3329 = vmatprep.mubr.msk.f32.mxu0 %vm199_vm12, %v7798_v47  ;;  %5997 = vmatprep.subr.bf16.mxu0 %v6257_v20 }
 0x296   :  { %6027 = vmatpush3.bf16.msra.mxu1 %v6515_v60 }
 0x297   :  { %3328 = vmatmul.mubr.msk.f32.gmra.mrb[56].mxu1 %vm7324_vm7, %v7798_v47  ;;  %6029 = vmatprep.subr.bf16.mxu1 %v6556_v22 }
 0x298   :  { %5999 = vmatpush3.bf16.msra.mxu0 %v6300_v35  ;;  %4890 = vmatprep.mubr.msk.f32.mxu1 %vm211_vm14, %v7798_v47 }
 0x299   :  { %6001 = vmatprep.subr.bf16.mxu0 %v6307_v37 }
 0x29a   :  { %6031 = vmatpush3.bf16.msra.mxu1 %v6556_v22 }
 0x29b   :  { %6033 = vmatprep.subr.bf16.mxu1 %v6576_v29 }
 0x29c   :  { %6003 = vmatpush3.bf16.msra.mxu0 %v6349_v50 }
 0x29d   :  { %6005 = vmatprep.subr.bf16.mxu0 %v6352_v51 }
 0x29e   :  { %6035 = vmatpush3.bf16.msra.mxu1 %v6576_v29 }
 0x29f   :  { %6037 = vmatprep.subr.bf16.mxu1 %v7812_v48 }
 0x2a0   :  { %6007 = vmatpush3.bf16.msra.mxu0 %v6387_v63 }
 0x2a1   :  { %6009 = vmatprep.subr.bf16.mxu0 %v6390_v2 }
 0x2a2   :  { %6039 = vmatpush3.bf16.msra.mxu1 %v7812_v48  ;;  %v4717_v10 = vpop.f32.mrb[34].mxu0  ;;  %v4029_v15 = vpop.f32.mrb[34].mxu1 }
 0x2a3   :  { %v1879_v20 = vadd.f32 %v4717_v10, %v1804_v3  ;;  %v1873_v35 = vpop.f32.mrb[35].mxu0  ;;  %v4030_v37 = vpop.f32.mrb[35].mxu1  ;;  %6041 = vmatprep.subr.bf16.mxu1 %v6617_v53 }
 0x2a4   :  { %6011 = vmatpush3.bf16.msra.mxu0 %v7806_v34  ;;  %v1874_v50 = vadd.f32 %v1873_v35, %v1799_v52  ;;  %v4031_v51 = vadd.f32 %v4030_v37, %v4029_v15  ;;  %v3032_v52 = vld [vmem:[%s7756_s3 + $0x10] sm:$0xff] }
 0x2a5   :  { %v1883_v28 = vmax.f32 %v1656_v4, %v1879_v20  ;;  %6013 = vmatprep.subr.bf16.mxu0 %v6428_v18  ;;  %v210_v18 = vpop.permute.xlu0 %209  ;;  %v6060_v39 = vpack.c.bf16 %v3033_v44, %v3032_v52 }
 0x2a6   :  { %v1882_v63 = vmax.f32 %v1655_v9, %v1874_v50  ;;  %6043 = vmatpush3.bf16.msra.mxu1 %v6617_v53  ;;  %v4032_v2 = vpop.f32.mrb[36].mxu1  ;;  %vm212_vm15 = vcmp.eq.s32.totalorder %v210_v18, %v6530_v7 }
 0x2a7   :  { %v4033_v42 = vpop.f32.mrb[37].mxu1  ;;  %6045 = vmatprep.subr.bf16.mxu1 %v6636_v62 }
 0x2a8   :  { %6015 = vmatpush3.bf16.msra.mxu0 %v6455_v33  ;;  %v4034_v46 = vadd.f32 %v4033_v42, %v4032_v2 }
 0x2a9   :  { %6017 = vmatprep.subr.bf16.mxu0 %v6465_v40 }
 0x2aa   :  { %6047 = vmatpush3.bf16.msra.mxu1 %v6636_v62 }
 0x2ab   :  { %6049 = vmatprep.subr.bf16.mxu1 %v6654_v1 }
 0x2ac   :  { %6019 = vmatpush3.bf16.msra.mxu0 %v6493_v49 }
 0x2ad   :  { %6021 = vmatprep.subr.bf16.mxu0 %v6502_v55 }
 0x2ae   :  { %6051 = vmatpush3.bf16.msra.mxu1 %v6654_v1 }
 0x2af   :  { %6053 = vmatprep.subr.bf16.mxu1 %v6675_v27 }
 0x2b0   :  { %6023 = vmatpush3.bf16.msra.mxu0 %v6518_v61 }
 0x2b1   :  { %6057 = vmatprep.subr.bf16.mxu0 %v6056_v43 }
 0x2b2   :  { %6055 = vmatpush3.bf16.msra.mxu1 %v6675_v27 }
 0x2b3   :  { %3330 = vmatmul.mubr.msk.f32.vlgmr.msra.gmra.mrb[56].mxu0 %vm187_vm10, %v7798_v47 }
 0x2b4   :  { %3331 = vmatprep.mubr.msk.f32.mxu0 %vm200_vm13, %v7798_v47  ;;  %6059 = vmatpush3.bf16.msra.mxu0 %v6056_v43 }
 0x2b5   :  { %4891 = vmatmul.mubr.msk.f32.vlgmr.msra.gmra.mrb[58].mxu1 %vm212_vm15, %v7798_v47  ;;  %6061 = vmatprep.subr.bf16.mxu0 %v6060_v39 }
 0x2b7   :  { %3332 = vmatmul.mubr.msk.f32.gmra.mrb[58].mxu0 %vm188_vm11, %v7798_v47 }
 0x2b8   :  { %6063 = vmatpush3.bf16.msra.mxu0 %v6060_v39 }
 0x2c2   :  { %v4067_v33 = vpop.f32.mrb[36].mxu0 }
 0x2c3   :  { %v4068_v40 = vpop.f32.mrb[37].mxu0  ;;  %v4752_v49 = vpop.f32.mrb[38].mxu1 }
 0x2c4   :  { %v4069_v55 = vadd.f32 %v4068_v40, %v4067_v33  ;;  %v2100_v59 = vpop.f32.mrb[39].mxu1 }
 0x2c6   :  { %v4070_v60 = vpop.f32.mrb[38].mxu0  ;;  %v2026_v61 = vadd.f32 %v4069_v55, %v4031_v51 }
 0x2c7   :  { %v4071_v22 = vpop.f32.mrb[39].mxu0 }
 0x2c8   :  { %v4072_v29 = vadd.f32 %v4071_v22, %v4070_v60  ;;  %v2101_v53 = vadd.f32 %v2100_v59, %v2026_v61 }
 0x2ca   :  { %v2031_v62 = vadd.f32 %v4072_v29, %v4034_v46  ;;  %v2109_v1 = vmax.f32 %v1882_v63, %v2101_v53 }
 0x2cc   :  { %v2106_v27 = vadd.f32 %v4752_v49, %v2031_v62 }
 0x2ce   :  { %v2110_v31 = vmax.f32 %v1883_v28, %v2106_v27 }
 0x2e3   :  { %v4123_v34 = vpop.f32.mrb[40].mxu0  ;;  %v4161_v21 = vpop.f32.mrb[40].mxu1 }
 0x2e4   :  { %v4124_v48 = vpop.f32.mrb[41].mxu0  ;;  %v4162_v0 = vpop.f32.mrb[41].mxu1 }
 0x2e5   :  { %v4125_v7 = vadd.f32 %v4124_v48, %v4123_v34  ;;  %v4163_v47 = vadd.f32 %v4162_v0, %v4161_v21 }
 0x2e7   :  { %v4126_v56 = vpop.f32.mrb[42].mxu0  ;;  %v4164_v57 = vpop.f32.mrb[42].mxu1  ;;  %v2253_v5 = vadd.f32 %v4163_v47, %v4125_v7 }
 0x2e8   :  { %v4127_v41 = vpop.f32.mrb[43].mxu0  ;;  %v4165_v14 = vpop.f32.mrb[43].mxu1 }
 0x2e9   :  { %v4128_v54 = vadd.f32 %v4127_v41, %v4126_v56  ;;  %v4166_v25 = vadd.f32 %v4165_v14, %v4164_v57 }
 0x2eb   :  { %v2258_v13 = vadd.f32 %v4166_v25, %v4128_v54 }
 0x304   :  { %v4787_v12 = vpop.f32.mrb[44].mxu0  ;;  %v4217_v24 = vpop.f32.mrb[44].mxu1 }
 0x305   :  { %v2333_v9 = vadd.f32 %v4787_v12, %v2258_v13  ;;  %v2327_v58 = vpop.f32.mrb[45].mxu0  ;;  %v4218_v4 = vpop.f32.mrb[45].mxu1 }
 0x306   :  { %v2328_v45 = vadd.f32 %v2327_v58, %v2253_v5  ;;  %v4219_v17 = vadd.f32 %v4218_v4, %v4217_v24  ;;  %v3335_v4 = vld [vmem:[%s7755_s2] ss:$0 sm:$0xff]  ;;  %s6166_s2 = smov 96  }
 0x307   :  { %v2337_v6 = vmax.f32 %v2110_v31, %v2333_v9 }
 0x308   :  { %v2336_v11 = vmax.f32 %v2109_v1, %v2328_v45  ;;  %v4220_v19 = vpop.f32.mrb[46].mxu1 }
 0x309   :  { %v4221_v26 = vpop.f32.mrb[47].mxu1 }
 0x30a   :  { %v4222_v30 = vadd.f32 %v4221_v26, %v4220_v19 }
 0x324   :  { %v4255_v32 = vpop.f32.mrb[46].mxu0 }
 0x325   :  { %v4256_v16 = vpop.f32.mrb[47].mxu0  ;;  %v4822_v3 = vpop.f32.mrb[48].mxu1 }
 0x326   :  { %v4257_v8 = vadd.f32 %v4256_v16, %v4255_v32  ;;  %v2554_v23 = vpop.f32.mrb[49].mxu1 }
 0x328   :  { %v4258_v10 = vpop.f32.mrb[48].mxu0  ;;  %v2480_v15 = vadd.f32 %v4257_v8, %v4219_v17 }
 0x329   :  { %v4259_v20 = vpop.f32.mrb[49].mxu0 }
 0x32a   :  { %v2555_v35 = vadd.f32 %v2554_v23, %v2480_v15  ;;  %v4260_v37 = vadd.f32 %v4259_v20, %v4258_v10 }
 0x32c   :  { %v2563_v50 = vmax.f32 %v2336_v11, %v2555_v35  ;;  %v2485_v51 = vadd.f32 %v4260_v37, %v4222_v30 }
 0x32e   :  { %v2560_v28 = vadd.f32 %v4822_v3, %v2485_v51 }
 0x330   :  { %v2564_v63 = vmax.f32 %v2337_v6, %v2560_v28 }
 0x345   :  { %v4311_v2 = vpop.f32.mrb[50].mxu0  ;;  %v4349_v42 = vpop.f32.mrb[50].mxu1 }
 0x346   :  { %v4312_v46 = vpop.f32.mrb[51].mxu0  ;;  %v4350_v18 = vpop.f32.mrb[51].mxu1 }
 0x347   :  { %v4313_v33 = vadd.f32 %v4312_v46, %v4311_v2  ;;  %v4351_v40 = vadd.f32 %v4350_v18, %v4349_v42 }
 0x349   :  { %v4314_v49 = vpop.f32.mrb[52].mxu0  ;;  %v4352_v55 = vpop.f32.mrb[52].mxu1  ;;  %v2707_v59 = vadd.f32 %v4351_v40, %v4313_v33 }
 0x34a   :  { %v4315_v60 = vpop.f32.mrb[53].mxu0  ;;  %v4353_v61 = vpop.f32.mrb[53].mxu1 }
 0x34b   :  { %v4316_v22 = vadd.f32 %v4315_v60, %v4314_v49  ;;  %v4354_v29 = vadd.f32 %v4353_v61, %v4352_v55 }
 0x34d   :  { %v2712_v53 = vadd.f32 %v4354_v29, %v4316_v22 }
 0x366   :  { %v4857_v62 = vpop.f32.mrb[54].mxu0  ;;  %v4405_v1 = vpop.f32.mrb[54].mxu1 }
 0x367   :  { %v2787_v27 = vadd.f32 %v4857_v62, %v2712_v53  ;;  %v2781_v31 = vpop.f32.mrb[55].mxu0  ;;  %v4406_v34 = vpop.f32.mrb[55].mxu1 }
 0x368   :  { %v2782_v21 = vadd.f32 %v2781_v31, %v2707_v59  ;;  %v4407_v48 = vadd.f32 %v4406_v34, %v4405_v1 }
 0x369   :  { %v2791_v0 = vmax.f32 %v2564_v63, %v2787_v27 }
 0x36a   :  { %v2790_v7 = vmax.f32 %v2563_v50, %v2782_v21  ;;  %v4408_v47 = vpop.f32.mrb[56].mxu1 }
 0x36b   :  { %v4409_v56 = vpop.f32.mrb[57].mxu1 }
 0x36c   :  { %v4410_v57 = vadd.f32 %v4409_v56, %v4408_v47 }
 0x386   :  { %v4443_v5 = vpop.f32.mrb[56].mxu0 }
 0x387   :  { %v4444_v41 = vpop.f32.mrb[57].mxu0 }
 0x388   :  { %v4445_v14 = vadd.f32 %v4444_v41, %v4443_v5  ;;  %v4892_v54 = vpop.f32.mrb[58].mxu1 }
 0x389   :  { %v3008_v25 = vpop.f32.mrb[59].mxu1 }
 0x38a   :  { %v4446_v13 = vpop.f32.mrb[58].mxu0  ;;  %v2934_v12 = vadd.f32 %v4445_v14, %v4407_v48 }
 0x38b   :  { %v4447_v24 = vpop.f32.mrb[59].mxu0 }
 0x38c   :  { %v4448_v9 = vadd.f32 %v4447_v24, %v4446_v13  ;;  %v3009_v58 = vadd.f32 %v3008_v25, %v2934_v12 }
 0x38e   :  { %v2939_v45 = vadd.f32 %v4448_v9, %v4410_v57  ;;  %v3017_v17 = vmax.f32 %v2790_v7, %v3009_v58 }
 0x390   :  { %v3014_v6 = vadd.f32 %v4892_v54, %v2939_v45  ;;  %v3026_v11 = vadd.f32 %v3335_v4, %v3017_v17 }
 0x392   :  { %v3018_v19 = vmax.f32 %v2791_v0, %v3014_v6  ;;  %v3028_v26 = vmax.f32 %v3026_v11, 0.0 }
 0x394   :  { %v3027_v30 = vadd.f32 %v3335_v4, %v3018_v19  ;;  %3147 = vrot.lane.b32.xlu0 %v3028_v26, %s6165_s18  ;;  %4901 = vmatprep.mubr.msk.f32.mxu0 %vm3041_vm0, %v3028_v26 }
 0x396   :  { %v3029_v36 = vmax.f32 %v3027_v30, 0.0 }
 0x398   :  { %4902 = vmatmul.mubr.msk.f32.vlgmr.msra.gmra.mrb[60].mxu0 %vm3041_vm0, %v3029_v36 }
 0x406   :  { %v3148_v2 = vpop.permute.xlu0 %3147 }
 0x46b   :  { %v4903_v43 = vpop.f32.mrb[60].mxu0 }
 0x46c   :  { %v3120_v52 = vadd.f32 %v4903_v43, %v3336_v38  ;;  %v3114_v44 = vpop.f32.mrb[61].mxu0 }
 0x46d   :  { %v3115_v32 = vadd.f32 %v3336_v38, %v3114_v44 }
 0x46e   :  { %v3124_v39 = vmax.f32 %v3120_v52, 0.0  ;;  %v3126_v23 = vsub.f32 0.0, %v3120_v52 }
 0x46f   :  { %v3123_v16 = vmax.f32 %v3115_v32, 0.0  ;;  %v3125_v3 = vsub.f32 0.0, %v3115_v32 }
 0x470   :  { %3139 = vrot.lane.b32.xlu1 %v3124_v39, %s6165_s18  ;;  %v3129_v10 = vmul.f32 1.442695, %v3126_v23 }
 0x471   :  { %v3127_v8 = vmul.f32 1.442695, %v3125_v3 }
 0x473   :  { %6114 = vpow2.f32 %v3127_v8 }
 0x474   :  { %3137 = vrot.lane.b32.xlu1 %v3123_v16, %s6165_s18  ;;  %6116 = vpow2.f32 %v3129_v10 }
 0x478   :  { %3149 = vrot.lane.b32.xlu1 %v3029_v36, %s6165_s18 }
 0x47d   :  { %v6115_v15 = vpop.eup %6114 }
 0x47e   :  { %v3131_v20 = vadd.f32 1.0, %v6115_v15  ;;  %v6117_v35 = vpop.eup %6116 }
 0x47f   :  { %v3132_v37 = vadd.f32 1.0, %v6117_v35 }
 0x480   :  { %6118 = vrcp.f32 %v3131_v20 }
 0x481   :  { %6120 = vrcp.f32 %v3132_v37 }
 0x48a   :  { %v6119_v50 = vpop.eup %6118 }
 0x48b   :  { %v3145_v28 = vsub.f32 1.0, %v6119_v50  ;;  %v6121_v63 = vpop.eup %6120 }
 0x48c   :  { %v3146_v40 = vsub.f32 1.0, %v6121_v63 }
 0x48d   :  { %v3153_v46 = vmul.f32 %v3148_v2, %v3145_v28 }
 0x4e2   :  { %v3140_v51 = vpop.permute.xlu1 %3139 }
 0x4e3   :  { %v3144_v55 = vmul.f32 %v6121_v63, %v3140_v51 }
 0x4e6   :  { %v3138_v42 = vpop.permute.xlu1 %3137 }
 0x4e7   :  { %v3143_v18 = vmul.f32 %v6119_v50, %v3138_v42 }
 0x4e9   :  { %v3155_v33 = vadd.f32 %v3153_v46, %v3143_v18 }
 0x4ea   :  { %v3150_v49 = vpop.permute.xlu1 %3149 }
 0x4eb   :  { %v3154_v59 = vmul.f32 %v3150_v49, %v3146_v40  ;;  %3159 = vrot.lane.b32.xlu0 %v3155_v33, %s6166_s2 }
 0x4ed   :  { %v3156_v60 = vadd.f32 %v3154_v59, %v3144_v55 }
 0x4ef   :  { %3161 = vrot.lane.b32.xlu1 %v3156_v60, %s6166_s2 }
 0x55d   :  { %v3160_v61 = vpop.permute.xlu0 %3159 }
 0x55e   :  { %3165 = vst.msk [vmem:[#allocation2] sm:$0xff] %vm3041_vm0, %v3160_v61 }
 0x561   :  { %v3162_v22 = vpop.permute.xlu1 %3161 }
 0x562   :  { %3166 = vst.msk [vmem:[#allocation2 + $0x8] sm:$0xff] %vm3041_vm0, %v3162_v22 }
 0x563   :  { %6135 = shalt.err (!%p6132_p4)
}
 0x564   :  { %s6136_s25 = scalar_lea.hbm %s7758_s5, 256 }
 0x565   :  { %p6137_p5 = scmp.ne.s32.totalorder %s7758_s5, %s6136_s25  ;;  %p6140_p6 = scmp.lt.u32.totalorder %s6136_s25, %s7758_s5 }
 0x567   :  { %p6142_p7 = pnand %p6140_p6, %p6137_p5 }
 0x569   :  { %6145 = shalt.err (!%p6142_p7)
}
 0x56a   :  { %s6168_s30 = smov 128   ;;  %s6169_s6 = smov 8  }
 0x56b   :  { %3178 = dma.vmem_to_hbm [thread:$0]  %s3173_s21, 256, %s7758_s5, [#allocation3], %s6168_s30, %s6168_s30, %s6169_s6  }
 0x56c   :  { %6146 = dma.done.wait [#allocation3], 256  }
 0x56d   :  { %6147 = vsyncadd [#allocation3], 4294967040 }
 0x56e   :  { %3182 = vsyncpa [#allocation3], 1 }

</bundles_post_ra>
